<compile_context>
chip_gen: v6e
topology: v6e:2x2x1
jax: 0.10.0
libtpu: 0.0.40
codegen_flags: <defaults>
</compile_context>

<pallas_src>
import math
from functools import partial

import jax
import jax.numpy as jnp
from jax.experimental import pallas as pl
from jax.experimental.pallas import tpu as pltpu

BN_EPS = 1e-3
LANE = 128  # TPU lane width; output channel dim is padded to a multiple of this.


def _round_up(x, m):
    return ((x + m - 1) // m) * m


# --------------------------------------------------------------------------------------
# Pallas kernel: tiled matmul + fused BN affine + activation (+ residual add)
# --------------------------------------------------------------------------------------
def _matmul_bn_act_kernel(a_ref, w_ref, s_ref, b_ref, *rest, act, has_residual):
    if has_residual:
        r_ref, o_ref, acc_ref = rest
    else:
        o_ref, acc_ref = rest

    kk = pl.program_id(2)

    @pl.when(kk == 0)
    def _init():
        acc_ref[...] = jnp.zeros_like(acc_ref)

    # MXU matmul on bf16 operands, f32 accumulation.
    acc_ref[...] += jnp.dot(a_ref[...], w_ref[...],
                            preferred_element_type=jnp.float32)

    @pl.when(kk == pl.num_programs(2) - 1)
    def _epilogue():
        y = acc_ref[...] * s_ref[...] + b_ref[...]        # fused BatchNorm affine (f32)
        if act == "silu":
            y = y * jax.nn.sigmoid(y)                     # SiLU (EUP sigmoid)
        if has_residual:
            # DropPath is identity in eval mode; shortcut add fused here.
            y = y + r_ref[...].astype(jnp.float32)
        o_ref[...] = y.astype(o_ref.dtype)


def matmul_bn_act(a, w, scale, bias, *, act="none", residual=None,
                  tm_max=256, tk_max=512, tn=LANE, out_dtype=jnp.bfloat16):
    """(M, K) @ (K, N) with fused BN affine + activation (+ residual add).

    a:        (M, K)  im2col rows (or 1x1-conv rows)
    w:        (K, N)  reshaped conv weight; N must be a multiple of 128 (lane-dense)
    scale/bias: (N,)  fused BatchNorm scale / bias (f32)
    residual: (M, N) or None, added after activation
    """
    M, K = a.shape
    K2, N = w.shape
    assert K == K2 and N % LANE == 0 and N % tn == 0

    # ---- tile sizing (fits v7x 64 MiB VMEM comfortably; v5e-friendly tn=128) --------
    tm = min(tm_max, _round_up(M, 8))
    M_pad = _round_up(M, tm)
    if K <= tk_max:
        tk, K_pad = K, K                     # single K block (full-dim block is legal)
    else:
        tk = tk_max
        K_pad = _round_up(K, tk)

    a = a.astype(jnp.bfloat16)
    w = w.astype(jnp.bfloat16)
    if M_pad != M or K_pad != K:
        a = jnp.pad(a, ((0, M_pad - M), (0, K_pad - K)))
    if K_pad != K:
        w = jnp.pad(w, ((0, K_pad - K), (0, 0)))

    scale = scale.reshape(1, N).astype(jnp.float32)
    bias = bias.reshape(1, N).astype(jnp.float32)

    grid = (M_pad // tm, N // tn, K_pad // tk)

    in_specs = [
        pl.BlockSpec((tm, tk), lambda i, j, r: (i, r)),
        pl.BlockSpec((tk, tn), lambda i, j, r: (r, j)),
        pl.BlockSpec((1, tn), lambda i, j, r: (0, j)),
        pl.BlockSpec((1, tn), lambda i, j, r: (0, j)),
    ]
    inputs = [a, w, scale, bias]

    has_residual = residual is not None
    if has_residual:
        res = residual.astype(jnp.bfloat16)
        if M_pad != M:
            res = jnp.pad(res, ((0, M_pad - M), (0, 0)))
        in_specs.append(pl.BlockSpec((tm, tn), lambda i, j, r: (i, j)))
        inputs.append(res)

    flops = 2 * M_pad * K_pad * N
    bytes_accessed = (M_pad * K_pad + K_pad * N) * 2 \
        + M_pad * N * 2 * (2 if has_residual else 1) + 2 * N * 4
    cost = pl.CostEstimate(
        flops=flops,
        transcendentals=M_pad * N if act == "silu" else 0,
        bytes_accessed=bytes_accessed,
    )

    out = pl.pallas_call(
        partial(_matmul_bn_act_kernel, act=act, has_residual=has_residual),
        out_shape=jax.ShapeDtypeStruct((M_pad, N), out_dtype),
        grid_spec=pltpu.PrefetchScalarGridSpec(
            num_scalar_prefetch=0,
            grid=grid,
            in_specs=in_specs,
            out_specs=pl.BlockSpec((tm, tn), lambda i, j, r: (i, j)),
            scratch_shapes=[pltpu.VMEM((tm, tn), jnp.float32)],
        ),
        compiler_params=pltpu.CompilerParams(
            dimension_semantics=("parallel", "parallel", "arbitrary"),
            vmem_limit_bytes=32 * 1024 * 1024,   # safe on v5e/v6e/v7x
        ),
        cost_estimate=cost,
    )(*inputs)

    return out[:M] if M_pad != M else out


# --------------------------------------------------------------------------------------
# JAX glue: patch extraction (NHWC, bf16)
# --------------------------------------------------------------------------------------
def _im2col(x, k, stride):
    """x: (B, H, W, C) -> (B*Ho*Wo, k*k*C), Ho, Wo. Tap-major, channel-minor columns."""
    if k == 1:
        if stride > 1:
            x = x[:, ::stride, ::stride, :]
        B, Ho, Wo, C = x.shape
        return x.reshape(B * Ho * Wo, C), Ho, Wo
    pad = (k - 1) // 2
    x = jnp.pad(x, ((0, 0), (pad, pad), (pad, pad), (0, 0)))
    B, Hp, Wp, C = x.shape
    Ho = (Hp - k) // stride + 1
    Wo = (Wp - k) // stride + 1
    taps = []
    for di in range(k):
        for dj in range(k):
            taps.append(x[:, di:di + stride * Ho:stride, dj:dj + stride * Wo:stride, :])
    patches = jnp.stack(taps, axis=3)                      # (B, Ho, Wo, k*k, C)
    return patches.reshape(B * Ho * Wo, k * k * C), Ho, Wo


def conv_bn_act_forward(x, p, *, stride, act, residual=None):
    """ConvBNAct on NHWC bf16 activations whose stored channel count may be padded
    (extra stored channels are exactly zero). Output is (B, Ho, Wo, N_pad) bf16 with
    true channels = Cout and padded channels exactly zero."""
    B, H, W, c_store = x.shape
    k, _, cin, cout = p["w"].shape
    assert c_store >= cin
    n_pad = _round_up(cout, LANE)

    # Zero-extend weight rows to the stored (padded) input channel count and weight
    # columns / BN params to the lane-dense output channel count.
    w = p["w"]
    if c_store != cin:
        w = jnp.pad(w, ((0, 0), (0, 0), (0, c_store - cin), (0, 0)))
    wm = w.reshape(k * k * c_store, cout)
    if n_pad != cout:
        wm = jnp.pad(wm, ((0, 0), (0, n_pad - cout)))
    scale = jnp.pad(p["scale"], (0, n_pad - cout))
    bias = jnp.pad(p["bias"], (0, n_pad - cout))

    a, Ho, Wo = _im2col(x, k, stride)

    res = None
    if residual is not None:
        rc = residual.shape[-1]
        if rc < n_pad:
            residual = jnp.pad(residual, ((0, 0), (0, 0), (0, 0), (0, n_pad - rc)))
        elif rc > n_pad:
            residual = residual[..., :n_pad]
        res = residual.reshape(B * Ho * Wo, n_pad)

    y = matmul_bn_act(a, wm, scale, bias, act=act, residual=res)
    return y.reshape(B, Ho, Wo, n_pad)


# --------------------------------------------------------------------------------------
# FusedMBConv parameters (deterministic synthetic init) and forward (eval mode)
# --------------------------------------------------------------------------------------
def _bn_scale_bias(c):
    # gamma=1, beta=0, running_mean=0, running_var=1 -> fused scale/bias
    return (jnp.full((c,), 1.0 / math.sqrt(1.0 + BN_EPS), jnp.float32),
            jnp.zeros((c,), jnp.float32))


def conv_bn_params(key, cin, cout, k):
    std = math.sqrt(2.0 / (cout * k * k))                  # kaiming-normal (fan_out)
    w = std * jax.random.normal(key, (k, k, cin, cout), jnp.float32)
    s, b = _bn_scale_bias(cout)
    return {"w": w, "scale": s, "bias": b}


def fused_mbconv_init(key, *, kernel_size, input_c, out_c, expand_ratio, stride,
                      se_ratio=0.0, drop_rate=0.0):
    assert stride in (1, 2)
    assert se_ratio == 0
    has_expansion = expand_ratio != 1
    expanded_c = input_c * expand_ratio
    k1, k2 = jax.random.split(key)
    blk = {
        "has_expansion": has_expansion,
        "has_shortcut": (stride == 1 and input_c == out_c),
        "stride": stride,
        "in_c": input_c,
        "out_c": out_c,
        "drop_rate": drop_rate,   # DropPath: identity in eval mode
    }
    if has_expansion:
        blk["expand"] = conv_bn_params(k1, input_c, expanded_c, kernel_size)
        blk["project"] = conv_bn_params(k2, expanded_c, out_c, 1)
    else:
        blk["project"] = conv_bn_params(k1, input_c, out_c, kernel_size)
    return blk


def fused_mbconv_forward(x, blk):
    """x: (B, H, W, C_store) bf16 NHWC (stored channels may be lane-padded, extras zero)."""
    shortcut = x if blk["has_shortcut"] else None
    if blk["has_expansion"]:
        r = conv_bn_act_forward(x, blk["expand"], stride=blk["stride"], act="silu")
        # project conv: Identity activation; residual fused into the matmul epilogue.
        r = conv_bn_act_forward(r, blk["project"], stride=1, act="none",
                                residual=shortcut)
    else:
        # single kxk ConvBNAct (SiLU) followed by the (fused) shortcut add.
        r = conv_bn_act_forward(x, blk["project"], stride=blk["stride"], act="silu",
                                residual=shortcut)
    return r


def fused_mbconv_stack_forward(blocks, x_nchw):
    """Public wrapper: NCHW f32 in -> NCHW f32 out (PyTorch convention)."""
    x = jnp.transpose(x_nchw, (0, 2, 3, 1)).astype(jnp.bfloat16)   # NCHW -> NHWC, bf16
    for blk in blocks:
        x = fused_mbconv_forward(x, blk)
    out_c = blocks[-1]["out_c"]
    x = x[..., :out_c].astype(jnp.float32)                          # drop lane padding
    return jnp.transpose(x, (0, 3, 1, 2))                           # NHWC -> NCHW


# --------------------------------------------------------------------------------------
if __name__ == "__main__":
    key = jax.random.PRNGKey(0)
    kp, kx = jax.random.split(key)
    k1, k2, k3 = jax.random.split(kp, 3)

    # Three FusedMBConv blocks covering all code paths of the PyTorch module:
    #   1) expand_ratio=1, stride=1  -> single 3x3 ConvBNAct + shortcut
    #   2) expand_ratio=4, stride=2  -> 3x3 expand + 1x1 project, no shortcut
    #   3) expand_ratio=4, stride=1  -> 3x3 expand + 1x1 project + fused shortcut
    blocks = [
        fused_mbconv_init(k1, kernel_size=3, input_c=8, out_c=8,
                          expand_ratio=1, stride=1, se_ratio=0.0, drop_rate=0.2),
        fused_mbconv_init(k2, kernel_size=3, input_c=8, out_c=16,
                          expand_ratio=4, stride=2, se_ratio=0.0, drop_rate=0.2),
        fused_mbconv_init(k3, kernel_size=3, input_c=16, out_c=16,
                          expand_ratio=4, stride=1, se_ratio=0.0, drop_rate=0.2),
    ]

    x = jax.random.normal(kx, (2, 8, 16, 16), jnp.float32)   # NCHW, like PyTorch

    fwd = jax.jit(partial(fused_mbconv_stack_forward, blocks))
    out = jax.block_until_ready(fwd(x))

    assert out.shape == (2, 16, 8, 8), out.shape
    assert bool(jnp.all(jnp.isfinite(out)))
    print("KERNEL_OK")
</pallas_src>

<mosaic_0001>
module attributes {stable_mosaic.version = 11 : i64} {
  func.func @_matmul_bn_act_kernel(%arg0: i32, %arg1: i32, %arg2: i32, %arg3: memref<256x72xbf16, #tpu.memory_space<vmem>>, %arg4: memref<72x128xbf16, #tpu.memory_space<vmem>>, %arg5: memref<1x128xf32, #tpu.memory_space<vmem>>, %arg6: memref<1x128xf32, #tpu.memory_space<vmem>>, %arg7: memref<256x128xbf16, #tpu.memory_space<vmem>>, %arg8: memref<256x128xbf16, #tpu.memory_space<vmem>>, %arg9: memref<256x128xf32, #tpu.memory_space<vmem>>) attributes {dimension_semantics = [#tpu.dimension_semantics<parallel>, #tpu.dimension_semantics<parallel>, #tpu.dimension_semantics<arbitrary>], iteration_bounds = array<i64: 2, 1, 1>, scalar_prefetch = 0 : i64, scratch_operands = 1 : i64, tpu.core_type = #tpu.core_type<tc>, window_params = [{transform_indices = @transform_0, window_bounds = array<i64: 256, 72>}, {transform_indices = @transform_1, window_bounds = array<i64: 72, 128>}, {transform_indices = @transform_2, window_bounds = array<i64: 1, 128>}, {transform_indices = @transform_3, window_bounds = array<i64: 1, 128>}, {transform_indices = @transform_4, window_bounds = array<i64: 256, 128>}, {transform_indices = @transform_5, window_bounds = array<i64: 256, 128>}]} {
    %c0_i32 = arith.constant 0 : i32
    %0 = arith.cmpi eq, %arg2, %c0_i32 : i32
    %1 = arith.extui %0 : i1 to i32
    %c0_i32_0 = arith.constant 0 : i32
    %2 = arith.cmpi ne, %1, %c0_i32_0 : i32
    scf.if %2 {
      %cst_10 = arith.constant 0.000000e+00 : f32
      %12 = vector.broadcast %cst_10 : f32 to vector<256x128xf32>
      %c0_11 = arith.constant 0 : index
      %c0_12 = arith.constant 0 : index
      %13 = vector.load %arg9[%c0_11, %c0_12] : memref<256x128xf32, #tpu.memory_space<vmem>>, vector<256x128xf32>
      tpu.vector_store %arg9[%c0_11, %c0_12], %12 {strides = array<i32>} : memref<256x128xf32, #tpu.memory_space<vmem>>, vector<256x128xf32>,
    } else {
    }
    %c0 = arith.constant 0 : index
    %c0_1 = arith.constant 0 : index
    %3 = vector.load %arg9[%c0, %c0_1] : memref<256x128xf32, #tpu.memory_space<vmem>>, vector<256x128xf32>
    %c0_2 = arith.constant 0 : index
    %c0_3 = arith.constant 0 : index
    %4 = vector.load %arg3[%c0_2, %c0_3] : memref<256x72xbf16, #tpu.memory_space<vmem>>, vector<256x72xbf16>
    %c0_4 = arith.constant 0 : index
    %c0_5 = arith.constant 0 : index
    %5 = vector.load %arg4[%c0_4, %c0_5] : memref<72x128xbf16, #tpu.memory_space<vmem>>, vector<72x128xbf16>
    %cst = arith.constant dense<0.000000e+00> : vector<256x128xf32>
    %6 = tpu.matmul %4, %5, %cst {dimension_numbers = #tpu.dot_dimension_numbers<[1], [0], [0], [1], [0, 0, 1, 1], [], []>} : vector<256x72xbf16>, vector<72x128xbf16>, vector<256x128xf32> -> vector<256x128xf32>
    %7 = arith.addf %3, %6 : vector<256x128xf32>
    %c0_6 = arith.constant 0 : index
    %c0_7 = arith.constant 0 : index
    %8 = vector.load %arg9[%c0_6, %c0_7] : memref<256x128xf32, #tpu.memory_space<vmem>>, vector<256x128xf32>
    tpu.vector_store %arg9[%c0_6, %c0_7], %7 {strides = array<i32>} : memref<256x128xf32, #tpu.memory_space<vmem>>, vector<256x128xf32>,
    %c0_i32_8 = arith.constant 0 : i32
    %9 = arith.cmpi eq, %arg2, %c0_i32_8 : i32
    %10 = arith.extui %9 : i1 to i32
    %c0_i32_9 = arith.constant 0 : i32
    %11 = arith.cmpi ne, %10, %c0_i32_9 : i32
    scf.if %11 {
      %c0_10 = arith.constant 0 : index
      %c0_11 = arith.constant 0 : index
      %12 = vector.load %arg9[%c0_10, %c0_11] : memref<256x128xf32, #tpu.memory_space<vmem>>, vector<256x128xf32>
      %c0_12 = arith.constant 0 : index
      %c0_13 = arith.constant 0 : index
      %13 = vector.load %arg5[%c0_12, %c0_13] : memref<1x128xf32, #tpu.memory_space<vmem>>, vector<1x128xf32>
      %14 = vector.broadcast %13 : vector<1x128xf32> to vector<256x128xf32>
      %15 = arith.mulf %12, %14 : vector<256x128xf32>
      %c0_14 = arith.constant 0 : index
      %c0_15 = arith.constant 0 : index
      %16 = vector.load %arg6[%c0_14, %c0_15] : memref<1x128xf32, #tpu.memory_space<vmem>>, vector<1x128xf32>
      %17 = vector.broadcast %16 : vector<1x128xf32> to vector<256x128xf32>
      %18 = arith.addf %15, %17 : vector<256x128xf32>
      %19 = arith.negf %18 : vector<256x128xf32>
      %20 = math.exp %19 : vector<256x128xf32>
      %cst_16 = arith.constant 1.000000e+00 : f32
      %21 = vector.broadcast %cst_16 : f32 to vector<256x128xf32>
      %22 = arith.addf %21, %20 : vector<256x128xf32>
      %23 = arith.divf %21, %22 : vector<256x128xf32>
      %24 = arith.mulf %18, %23 : vector<256x128xf32>
      %c0_17 = arith.constant 0 : index
      %c0_18 = arith.constant 0 : index
      %25 = vector.load %arg7[%c0_17, %c0_18] : memref<256x128xbf16, #tpu.memory_space<vmem>>, vector<256x128xbf16>
      %26 = arith.extf %25 : vector<256x128xbf16> to vector<256x128xf32>
      %27 = arith.addf %24, %26 : vector<256x128xf32>
      %28 = arith.truncf %27 : vector<256x128xf32> to vector<256x128xbf16>
      %c0_19 = arith.constant 0 : index
      %c0_20 = arith.constant 0 : index
      %29 = vector.load %arg8[%c0_19, %c0_20] : memref<256x128xbf16, #tpu.memory_space<vmem>>, vector<256x128xbf16>
      tpu.vector_store %arg8[%c0_19, %c0_20], %28 {strides = array<i32>} : memref<256x128xbf16, #tpu.memory_space<vmem>>, vector<256x128xbf16>,
    } else {
    }
    return
  }
  func.func @transform_0(%arg0: i32, %arg1: i32, %arg2: i32) -> (i32, i32) {
    %c0_i32 = arith.constant 0 : i32
    return %arg0, %arg2 : i32, i32
  }
  func.func @transform_1(%arg0: i32, %arg1: i32, %arg2: i32) -> (i32, i32) {
    %c0_i32 = arith.constant 0 : i32
    return %arg2, %arg1 : i32, i32
  }
  func.func @transform_2(%arg0: i32, %arg1: i32, %arg2: i32) -> (i32, i32) {
    %c0_i32 = arith.constant 0 : i32
    %c0_i32_0 = arith.constant 0 : i32
    return %c0_i32, %arg1 : i32, i32
  }
  func.func @transform_3(%arg0: i32, %arg1: i32, %arg2: i32) -> (i32, i32) {
    %c0_i32 = arith.constant 0 : i32
    %c0_i32_0 = arith.constant 0 : i32
    return %c0_i32, %arg1 : i32, i32
  }
  func.func @transform_4(%arg0: i32, %arg1: i32, %arg2: i32) -> (i32, i32) {
    %c0_i32 = arith.constant 0 : i32
    return %arg0, %arg1 : i32, i32
  }
  func.func @transform_5(%arg0: i32, %arg1: i32, %arg2: i32) -> (i32, i32) {
    %c0_i32 = arith.constant 0 : i32
    return %arg0, %arg1 : i32, i32
  }
}

module attributes {stable_mosaic.version = 11 : i64} {
  func.func @_matmul_bn_act_kernel(%arg0: i32, %arg1: i32, %arg2: i32, %arg3: memref<128x512xbf16, #tpu.memory_space<vmem>>, %arg4: memref<512x128xbf16, #tpu.memory_space<vmem>>, %arg5: memref<1x128xf32, #tpu.memory_space<vmem>>, %arg6: memref<1x128xf32, #tpu.memory_space<vmem>>, %arg7: memref<128x128xbf16, #tpu.memory_space<vmem>>, %arg8: memref<128x128xf32, #tpu.memory_space<vmem>>) attributes {dimension_semantics = [#tpu.dimension_semantics<parallel>, #tpu.dimension_semantics<parallel>, #tpu.dimension_semantics<arbitrary>], iteration_bounds = array<i64: 1, 1, 3>, scalar_prefetch = 0 : i64, scratch_operands = 1 : i64, tpu.core_type = #tpu.core_type<tc>, window_params = [{transform_indices = @transform_0, window_bounds = array<i64: 128, 512>}, {transform_indices = @transform_1, window_bounds = array<i64: 512, 128>}, {transform_indices = @transform_2, window_bounds = array<i64: 1, 128>}, {transform_indices = @transform_3, window_bounds = array<i64: 1, 128>}, {transform_indices = @transform_4, window_bounds = array<i64: 128, 128>}]} {
    %c0_i32 = arith.constant 0 : i32
    %0 = arith.cmpi eq, %arg2, %c0_i32 : i32
    %1 = arith.extui %0 : i1 to i32
    %c0_i32_0 = arith.constant 0 : i32
    %2 = arith.cmpi ne, %1, %c0_i32_0 : i32
    scf.if %2 {
      %cst_9 = arith.constant 0.000000e+00 : f32
      %12 = vector.broadcast %cst_9 : f32 to vector<128x128xf32>
      %c0_10 = arith.constant 0 : index
      %c0_11 = arith.constant 0 : index
      %13 = vector.load %arg8[%c0_10, %c0_11] : memref<128x128xf32, #tpu.memory_space<vmem>>, vector<128x128xf32>
      tpu.vector_store %arg8[%c0_10, %c0_11], %12 {strides = array<i32>} : memref<128x128xf32, #tpu.memory_space<vmem>>, vector<128x128xf32>,
    } else {
    }
    %c0 = arith.constant 0 : index
    %c0_1 = arith.constant 0 : index
    %3 = vector.load %arg8[%c0, %c0_1] : memref<128x128xf32, #tpu.memory_space<vmem>>, vector<128x128xf32>
    %c0_2 = arith.constant 0 : index
    %c0_3 = arith.constant 0 : index
    %4 = vector.load %arg3[%c0_2, %c0_3] : memref<128x512xbf16, #tpu.memory_space<vmem>>, vector<128x512xbf16>
    %c0_4 = arith.constant 0 : index
    %c0_5 = arith.constant 0 : index
    %5 = vector.load %arg4[%c0_4, %c0_5] : memref<512x128xbf16, #tpu.memory_space<vmem>>, vector<512x128xbf16>
    %cst = arith.constant dense<0.000000e+00> : vector<128x128xf32>
    %6 = tpu.matmul %4, %5, %cst {dimension_numbers = #tpu.dot_dimension_numbers<[1], [0], [0], [1], [0, 0, 1, 1], [], []>} : vector<128x512xbf16>, vector<512x128xbf16>, vector<128x128xf32> -> vector<128x128xf32>
    %7 = arith.addf %3, %6 : vector<128x128xf32>
    %c0_6 = arith.constant 0 : index
    %c0_7 = arith.constant 0 : index
    %8 = vector.load %arg8[%c0_6, %c0_7] : memref<128x128xf32, #tpu.memory_space<vmem>>, vector<128x128xf32>
    tpu.vector_store %arg8[%c0_6, %c0_7], %7 {strides = array<i32>} : memref<128x128xf32, #tpu.memory_space<vmem>>, vector<128x128xf32>,
    %c2_i32 = arith.constant 2 : i32
    %9 = arith.cmpi eq, %arg2, %c2_i32 : i32
    %10 = arith.extui %9 : i1 to i32
    %c0_i32_8 = arith.constant 0 : i32
    %11 = arith.cmpi ne, %10, %c0_i32_8 : i32
    scf.if %11 {
      %c0_9 = arith.constant 0 : index
      %c0_10 = arith.constant 0 : index
      %12 = vector.load %arg8[%c0_9, %c0_10] : memref<128x128xf32, #tpu.memory_space<vmem>>, vector<128x128xf32>
      %c0_11 = arith.constant 0 : index
      %c0_12 = arith.constant 0 : index
      %13 = vector.load %arg5[%c0_11, %c0_12] : memref<1x128xf32, #tpu.memory_space<vmem>>, vector<1x128xf32>
      %14 = vector.broadcast %13 : vector<1x128xf32> to vector<128x128xf32>
      %15 = arith.mulf %12, %14 : vector<128x128xf32>
      %c0_13 = arith.constant 0 : index
      %c0_14 = arith.constant 0 : index
      %16 = vector.load %arg6[%c0_13, %c0_14] : memref<1x128xf32, #tpu.memory_space<vmem>>, vector<1x128xf32>
      %17 = vector.broadcast %16 : vector<1x128xf32> to vector<128x128xf32>
      %18 = arith.addf %15, %17 : vector<128x128xf32>
      %19 = arith.negf %18 : vector<128x128xf32>
      %20 = math.exp %19 : vector<128x128xf32>
      %cst_15 = arith.constant 1.000000e+00 : f32
      %21 = vector.broadcast %cst_15 : f32 to vector<128x128xf32>
      %22 = arith.addf %21, %20 : vector<128x128xf32>
      %23 = arith.divf %21, %22 : vector<128x128xf32>
      %24 = arith.mulf %18, %23 : vector<128x128xf32>
      %25 = arith.truncf %24 : vector<128x128xf32> to vector<128x128xbf16>
      %c0_16 = arith.constant 0 : index
      %c0_17 = arith.constant 0 : index
      %26 = vector.load %arg7[%c0_16, %c0_17] : memref<128x128xbf16, #tpu.memory_space<vmem>>, vector<128x128xbf16>
      tpu.vector_store %arg7[%c0_16, %c0_17], %25 {strides = array<i32>} : memref<128x128xbf16, #tpu.memory_space<vmem>>, vector<128x128xbf16>,
    } else {
    }
    return
  }
  func.func @transform_0(%arg0: i32, %arg1: i32, %arg2: i32) -> (i32, i32) {
    %c0_i32 = arith.constant 0 : i32
    return %arg0, %arg2 : i32, i32
  }
  func.func @transform_1(%arg0: i32, %arg1: i32, %arg2: i32) -> (i32, i32) {
    %c0_i32 = arith.constant 0 : i32
    return %arg2, %arg1 : i32, i32
  }
  func.func @transform_2(%arg0: i32, %arg1: i32, %arg2: i32) -> (i32, i32) {
    %c0_i32 = arith.constant 0 : i32
    %c0_i32_0 = arith.constant 0 : i32
    return %c0_i32, %arg1 : i32, i32
  }
  func.func @transform_3(%arg0: i32, %arg1: i32, %arg2: i32) -> (i32, i32) {
    %c0_i32 = arith.constant 0 : i32
    %c0_i32_0 = arith.constant 0 : i32
    return %c0_i32, %arg1 : i32, i32
  }
  func.func @transform_4(%arg0: i32, %arg1: i32, %arg2: i32) -> (i32, i32) {
    %c0_i32 = arith.constant 0 : i32
    return %arg0, %arg1 : i32, i32
  }
}

module attributes {stable_mosaic.version = 11 : i64} {
  func.func @_matmul_bn_act_kernel(%arg0: i32, %arg1: i32, %arg2: i32, %arg3: memref<128x128xbf16, #tpu.memory_space<vmem>>, %arg4: memref<128x128xbf16, #tpu.memory_space<vmem>>, %arg5: memref<1x128xf32, #tpu.memory_space<vmem>>, %arg6: memref<1x128xf32, #tpu.memory_space<vmem>>, %arg7: memref<128x128xbf16, #tpu.memory_space<vmem>>, %arg8: memref<128x128xf32, #tpu.memory_space<vmem>>) attributes {dimension_semantics = [#tpu.dimension_semantics<parallel>, #tpu.dimension_semantics<parallel>, #tpu.dimension_semantics<arbitrary>], iteration_bounds = array<i64: 1, 1, 1>, scalar_prefetch = 0 : i64, scratch_operands = 1 : i64, tpu.core_type = #tpu.core_type<tc>, window_params = [{transform_indices = @transform_0, window_bounds = array<i64: 128, 128>}, {transform_indices = @transform_1, window_bounds = array<i64: 128, 128>}, {transform_indices = @transform_2, window_bounds = array<i64: 1, 128>}, {transform_indices = @transform_3, window_bounds = array<i64: 1, 128>}, {transform_indices = @transform_4, window_bounds = array<i64: 128, 128>}]} {
    %c0_i32 = arith.constant 0 : i32
    %0 = arith.cmpi eq, %arg2, %c0_i32 : i32
    %1 = arith.extui %0 : i1 to i32
    %c0_i32_0 = arith.constant 0 : i32
    %2 = arith.cmpi ne, %1, %c0_i32_0 : i32
    scf.if %2 {
      %cst_10 = arith.constant 0.000000e+00 : f32
      %12 = vector.broadcast %cst_10 : f32 to vector<128x128xf32>
      %c0_11 = arith.constant 0 : index
      %c0_12 = arith.constant 0 : index
      %13 = vector.load %arg8[%c0_11, %c0_12] : memref<128x128xf32, #tpu.memory_space<vmem>>, vector<128x128xf32>
      tpu.vector_store %arg8[%c0_11, %c0_12], %12 {strides = array<i32>} : memref<128x128xf32, #tpu.memory_space<vmem>>, vector<128x128xf32>,
    } else {
    }
    %c0 = arith.constant 0 : index
    %c0_1 = arith.constant 0 : index
    %3 = vector.load %arg8[%c0, %c0_1] : memref<128x128xf32, #tpu.memory_space<vmem>>, vector<128x128xf32>
    %c0_2 = arith.constant 0 : index
    %c0_3 = arith.constant 0 : index
    %4 = vector.load %arg3[%c0_2, %c0_3] : memref<128x128xbf16, #tpu.memory_space<vmem>>, vector<128x128xbf16>
    %c0_4 = arith.constant 0 : index
    %c0_5 = arith.constant 0 : index
    %5 = vector.load %arg4[%c0_4, %c0_5] : memref<128x128xbf16, #tpu.memory_space<vmem>>, vector<128x128xbf16>
    %cst = arith.constant dense<0.000000e+00> : vector<128x128xf32>
    %6 = tpu.matmul %4, %5, %cst {dimension_numbers = #tpu.dot_dimension_numbers<[1], [0], [0], [1], [0, 0, 1, 1], [], []>} : vector<128x128xbf16>, vector<128x128xbf16>, vector<128x128xf32> -> vector<128x128xf32>
    %7 = arith.addf %3, %6 : vector<128x128xf32>
    %c0_6 = arith.constant 0 : index
    %c0_7 = arith.constant 0 : index
    %8 = vector.load %arg8[%c0_6, %c0_7] : memref<128x128xf32, #tpu.memory_space<vmem>>, vector<128x128xf32>
    tpu.vector_store %arg8[%c0_6, %c0_7], %7 {strides = array<i32>} : memref<128x128xf32, #tpu.memory_space<vmem>>, vector<128x128xf32>,
    %c0_i32_8 = arith.constant 0 : i32
    %9 = arith.cmpi eq, %arg2, %c0_i32_8 : i32
    %10 = arith.extui %9 : i1 to i32
    %c0_i32_9 = arith.constant 0 : i32
    %11 = arith.cmpi ne, %10, %c0_i32_9 : i32
    scf.if %11 {
      %c0_10 = arith.constant 0 : index
      %c0_11 = arith.constant 0 : index
      %12 = vector.load %arg8[%c0_10, %c0_11] : memref<128x128xf32, #tpu.memory_space<vmem>>, vector<128x128xf32>
      %c0_12 = arith.constant 0 : index
      %c0_13 = arith.constant 0 : index
      %13 = vector.load %arg5[%c0_12, %c0_13] : memref<1x128xf32, #tpu.memory_space<vmem>>, vector<1x128xf32>
      %14 = vector.broadcast %13 : vector<1x128xf32> to vector<128x128xf32>
      %15 = arith.mulf %12, %14 : vector<128x128xf32>
      %c0_14 = arith.constant 0 : index
      %c0_15 = arith.constant 0 : index
      %16 = vector.load %arg6[%c0_14, %c0_15] : memref<1x128xf32, #tpu.memory_space<vmem>>, vector<1x128xf32>
      %17 = vector.broadcast %16 : vector<1x128xf32> to vector<128x128xf32>
      %18 = arith.addf %15, %17 : vector<128x128xf32>
      %19 = arith.truncf %18 : vector<128x128xf32> to vector<128x128xbf16>
      %c0_16 = arith.constant 0 : index
      %c0_17 = arith.constant 0 : index
      %20 = vector.load %arg7[%c0_16, %c0_17] : memref<128x128xbf16, #tpu.memory_space<vmem>>, vector<128x128xbf16>
      tpu.vector_store %arg7[%c0_16, %c0_17], %19 {strides = array<i32>} : memref<128x128xbf16, #tpu.memory_space<vmem>>, vector<128x128xbf16>,
    } else {
    }
    return
  }
  func.func @transform_0(%arg0: i32, %arg1: i32, %arg2: i32) -> (i32, i32) {
    %c0_i32 = arith.constant 0 : i32
    return %arg0, %arg2 : i32, i32
  }
  func.func @transform_1(%arg0: i32, %arg1: i32, %arg2: i32) -> (i32, i32) {
    %c0_i32 = arith.constant 0 : i32
    return %arg2, %arg1 : i32, i32
  }
  func.func @transform_2(%arg0: i32, %arg1: i32, %arg2: i32) -> (i32, i32) {
    %c0_i32 = arith.constant 0 : i32
    %c0_i32_0 = arith.constant 0 : i32
    return %c0_i32, %arg1 : i32, i32
  }
  func.func @transform_3(%arg0: i32, %arg1: i32, %arg2: i32) -> (i32, i32) {
    %c0_i32 = arith.constant 0 : i32
    %c0_i32_0 = arith.constant 0 : i32
    return %c0_i32, %arg1 : i32, i32
  }
  func.func @transform_4(%arg0: i32, %arg1: i32, %arg2: i32) -> (i32, i32) {
    %c0_i32 = arith.constant 0 : i32
    return %arg0, %arg1 : i32, i32
  }
}

module attributes {stable_mosaic.version = 11 : i64} {
  func.func @_matmul_bn_act_kernel(%arg0: i32, %arg1: i32, %arg2: i32, %arg3: memref<128x128xbf16, #tpu.memory_space<vmem>>, %arg4: memref<128x128xbf16, #tpu.memory_space<vmem>>, %arg5: memref<1x128xf32, #tpu.memory_space<vmem>>, %arg6: memref<1x128xf32, #tpu.memory_space<vmem>>, %arg7: memref<128x128xbf16, #tpu.memory_space<vmem>>, %arg8: memref<128x128xbf16, #tpu.memory_space<vmem>>, %arg9: memref<128x128xf32, #tpu.memory_space<vmem>>) attributes {dimension_semantics = [#tpu.dimension_semantics<parallel>, #tpu.dimension_semantics<parallel>, #tpu.dimension_semantics<arbitrary>], iteration_bounds = array<i64: 1, 1, 1>, scalar_prefetch = 0 : i64, scratch_operands = 1 : i64, tpu.core_type = #tpu.core_type<tc>, window_params = [{transform_indices = @transform_0, window_bounds = array<i64: 128, 128>}, {transform_indices = @transform_1, window_bounds = array<i64: 128, 128>}, {transform_indices = @transform_2, window_bounds = array<i64: 1, 128>}, {transform_indices = @transform_3, window_bounds = array<i64: 1, 128>}, {transform_indices = @transform_4, window_bounds = array<i64: 128, 128>}, {transform_indices = @transform_5, window_bounds = array<i64: 128, 128>}]} {
    %c0_i32 = arith.constant 0 : i32
    %0 = arith.cmpi eq, %arg2, %c0_i32 : i32
    %1 = arith.extui %0 : i1 to i32
    %c0_i32_0 = arith.constant 0 : i32
    %2 = arith.cmpi ne, %1, %c0_i32_0 : i32
    scf.if %2 {
      %cst_10 = arith.constant 0.000000e+00 : f32
      %12 = vector.broadcast %cst_10 : f32 to vector<128x128xf32>
      %c0_11 = arith.constant 0 : index
      %c0_12 = arith.constant 0 : index
      %13 = vector.load %arg9[%c0_11, %c0_12] : memref<128x128xf32, #tpu.memory_space<vmem>>, vector<128x128xf32>
      tpu.vector_store %arg9[%c0_11, %c0_12], %12 {strides = array<i32>} : memref<128x128xf32, #tpu.memory_space<vmem>>, vector<128x128xf32>,
    } else {
    }
    %c0 = arith.constant 0 : index
    %c0_1 = arith.constant 0 : index
    %3 = vector.load %arg9[%c0, %c0_1] : memref<128x128xf32, #tpu.memory_space<vmem>>, vector<128x128xf32>
    %c0_2 = arith.constant 0 : index
    %c0_3 = arith.constant 0 : index
    %4 = vector.load %arg3[%c0_2, %c0_3] : memref<128x128xbf16, #tpu.memory_space<vmem>>, vector<128x128xbf16>
    %c0_4 = arith.constant 0 : index
    %c0_5 = arith.constant 0 : index
    %5 = vector.load %arg4[%c0_4, %c0_5] : memref<128x128xbf16, #tpu.memory_space<vmem>>, vector<128x128xbf16>
    %cst = arith.constant dense<0.000000e+00> : vector<128x128xf32>
    %6 = tpu.matmul %4, %5, %cst {dimension_numbers = #tpu.dot_dimension_numbers<[1], [0], [0], [1], [0, 0, 1, 1], [], []>} : vector<128x128xbf16>, vector<128x128xbf16>, vector<128x128xf32> -> vector<128x128xf32>
    %7 = arith.addf %3, %6 : vector<128x128xf32>
    %c0_6 = arith.constant 0 : index
    %c0_7 = arith.constant 0 : index
    %8 = vector.load %arg9[%c0_6, %c0_7] : memref<128x128xf32, #tpu.memory_space<vmem>>, vector<128x128xf32>
    tpu.vector_store %arg9[%c0_6, %c0_7], %7 {strides = array<i32>} : memref<128x128xf32, #tpu.memory_space<vmem>>, vector<128x128xf32>,
    %c0_i32_8 = arith.constant 0 : i32
    %9 = arith.cmpi eq, %arg2, %c0_i32_8 : i32
    %10 = arith.extui %9 : i1 to i32
    %c0_i32_9 = arith.constant 0 : i32
    %11 = arith.cmpi ne, %10, %c0_i32_9 : i32
    scf.if %11 {
      %c0_10 = arith.constant 0 : index
      %c0_11 = arith.constant 0 : index
      %12 = vector.load %arg9[%c0_10, %c0_11] : memref<128x128xf32, #tpu.memory_space<vmem>>, vector<128x128xf32>
      %c0_12 = arith.constant 0 : index
      %c0_13 = arith.constant 0 : index
      %13 = vector.load %arg5[%c0_12, %c0_13] : memref<1x128xf32, #tpu.memory_space<vmem>>, vector<1x128xf32>
      %14 = vector.broadcast %13 : vector<1x128xf32> to vector<128x128xf32>
      %15 = arith.mulf %12, %14 : vector<128x128xf32>
      %c0_14 = arith.constant 0 : index
      %c0_15 = arith.constant 0 : index
      %16 = vector.load %arg6[%c0_14, %c0_15] : memref<1x128xf32, #tpu.memory_space<vmem>>, vector<1x128xf32>
      %17 = vector.broadcast %16 : vector<1x128xf32> to vector<128x128xf32>
      %18 = arith.addf %15, %17 : vector<128x128xf32>
      %c0_16 = arith.constant 0 : index
      %c0_17 = arith.constant 0 : index
      %19 = vector.load %arg7[%c0_16, %c0_17] : memref<128x128xbf16, #tpu.memory_space<vmem>>, vector<128x128xbf16>
      %20 = arith.extf %19 : vector<128x128xbf16> to vector<128x128xf32>
      %21 = arith.addf %18, %20 : vector<128x128xf32>
      %22 = arith.truncf %21 : vector<128x128xf32> to vector<128x128xbf16>
      %c0_18 = arith.constant 0 : index
      %c0_19 = arith.constant 0 : index
      %23 = vector.load %arg8[%c0_18, %c0_19] : memref<128x128xbf16, #tpu.memory_space<vmem>>, vector<128x128xbf16>
      tpu.vector_store %arg8[%c0_18, %c0_19], %22 {strides = array<i32>} : memref<128x128xbf16, #tpu.memory_space<vmem>>, vector<128x128xbf16>,
    } else {
    }
    return
  }
  func.func @transform_0(%arg0: i32, %arg1: i32, %arg2: i32) -> (i32, i32) {
    %c0_i32 = arith.constant 0 : i32
    return %arg0, %arg2 : i32, i32
  }
  func.func @transform_1(%arg0: i32, %arg1: i32, %arg2: i32) -> (i32, i32) {
    %c0_i32 = arith.constant 0 : i32
    return %arg2, %arg1 : i32, i32
  }
  func.func @transform_2(%arg0: i32, %arg1: i32, %arg2: i32) -> (i32, i32) {
    %c0_i32 = arith.constant 0 : i32
    %c0_i32_0 = arith.constant 0 : i32
    return %c0_i32, %arg1 : i32, i32
  }
  func.func @transform_3(%arg0: i32, %arg1: i32, %arg2: i32) -> (i32, i32) {
    %c0_i32 = arith.constant 0 : i32
    %c0_i32_0 = arith.constant 0 : i32
    return %c0_i32, %arg1 : i32, i32
  }
  func.func @transform_4(%arg0: i32, %arg1: i32, %arg2: i32) -> (i32, i32) {
    %c0_i32 = arith.constant 0 : i32
    return %arg0, %arg1 : i32, i32
  }
  func.func @transform_5(%arg0: i32, %arg1: i32, %arg2: i32) -> (i32, i32) {
    %c0_i32 = arith.constant 0 : i32
    return %arg0, %arg1 : i32, i32
  }
}

</mosaic_0001>

<bundles_post_ra>
// kernel: fused_mbconv_stack_forward.6
= control target key start
LH: loop header
LB: loop body
LE: loop exit
PB: predicated region body
PF: predicated region fallthrough
CT: control target
= control target key end

     0   :  { %s2027_s15 = smov 0   ;;  %s2029_s16 = smov 0   ;;  %s2360_s0 = inlined_call_operand.vmem [shape: bf16[128,1536], index: 0, kind: input, shape index: {}]   ;;  %s2361_s1 = inlined_call_operand.vmem [shape: bf16[1536,128], index: 1, kind: input, shape index: {}]   ;;  %s2362_s2 = inlined_call_operand.vmem [shape: f32[1,128], index: 2, kind: input, shape index: {}]   ;;  %s2363_s3 = inlined_call_operand.vmem [shape: f32[1,128], index: 3, kind: input, shape index: {}]   ;;  %s2364_s4 = inlined_call_operand.vmem [shape: bf16[128,128], index: 4, kind: output, shape index: {}]  }
   0x1   :  { %s2031_s17 = smov 0   ;;  %s2033_s18 = smov 0  }
   0x2   :  { %s2035_s19 = smov 0  }
   0x3 LB: > { %s26_s20 = sadd.s32 1, %s1995_s18  ;;  %p49_p1 = scmp.ne.s32.totalorder %s1987_s16, %s1983_s15  ;;  %s1999_s19 = sphi %s2035_s19, %s14_s19   ;;  %s1995_s18 = sphi %s2033_s18, %s2368_s18   ;;  %s1991_s17 = sphi %s2031_s17, %s2367_s17   ;;  %s1987_s16 = sphi %s2029_s16, %s2366_s16   ;;  %s1983_s15 = sphi %s2027_s15, %s2365_s15  }
   0x4   : > { %p27_p0 = scmp.ge.s32.totalorder %s26_s20, 3  ;;  %p50_p2 = scmp.eq.s32.totalorder %s1999_s19, 0 }
   0x5   : > { %s42_s22 = sadd.s32 1, %s1987_s16  ;;  %p1472_p5 = scmp.ge.s32.totalorder %s1999_s19, 3 }
   0x6   : > { %s2370_s20 = smov (%p27_p0, %s26_s20), 0  ;;  %p51_p3 = por %p50_p2, %p49_p1 }
   0x7   : > { %s38_s21 = ssub.s32 %s1995_s18, %s2370_s20  ;;  %195 = sbr.rel (%p1472_p5) target bundleno = 32 (0x20), region = 24 }
   0x8   : > { %p40_p4 = scmp.eq.s32.totalorder %s38_s21, 0 }
   0xa   : > { %s2062_s23 = scalar_select %p40_p4, %s1987_s16, %s42_s22  }
   0xc   : > { %198 = sbr.rel (!%p51_p3) target bundleno = 32 (0x20), region = 28  ;;  %s200_s24 = sand.u32 (%p51_p3), 1, %s1987_s16  }
   0xd   : > { %s1584_s25 = sshll.u32 (%p51_p3), %s1995_s18, 4  ;;  %s1473_s26 = sshll.u32 (%p51_p3), %s200_s24, 8 }
   0xe   : > { %s2070_s29 = scalar_lea.vmem (%p51_p3), %s2360_s0, %s1584_s25  ;;  %s2075_s30 = scalar_lea.vmem (%p51_p3), [#allocation3], %s1473_s26 }
   0xf   : > { %v221_v0 = vld [vmem:[%s2070_s29] sm:$0xff] (%p51_p3)  ;;  %v223_v1 = vld [vmem:[%s2070_s29 + $0x8] sm:$0xff] (%p51_p3)  ;;  %v225_v2 = vld [vmem:[%s2070_s29 + $0x30] sm:$0xff] (%p51_p3) }
  0x10   : > { %222 = vst [vmem:[%s2075_s30] sm:$0xff] (%p51_p3), %v221_v0  ;;  %224 = vst [vmem:[%s2075_s30 + $0x8] sm:$0xff] (%p51_p3), %v223_v1  ;;  %v227_v3 = vld [vmem:[%s2070_s29 + $0x38] sm:$0xff] (%p51_p3)  ;;  %v229_v4 = vld [vmem:[%s2070_s29 + $0x60] sm:$0xff] (%p51_p3) }
  0x11   : > { %226 = vst [vmem:[%s2075_s30 + $0x10] sm:$0xff] %v225_v2  ;;  %v231_v5 = vld [vmem:[%s2070_s29 + $0x68] sm:$0xff]  ;;  %228 = vst [vmem:[%s2075_s30 + $0x18] sm:$0xff] %v227_v3  ;;  %v233_v6 = vld [vmem:[%s2070_s29 + $0x90] sm:$0xff] }
  0x12   : > { %230 = vst [vmem:[%s2075_s30 + $0x20] sm:$0xff] %v229_v4  ;;  %232 = vst [vmem:[%s2075_s30 + $0x28] sm:$0xff] %v231_v5  ;;  %v235_v7 = vld [vmem:[%s2070_s29 + $0x98] sm:$0xff]  ;;  %v237_v8 = vld [vmem:[%s2070_s29 + $0xc0] sm:$0xff] }
  0x13   : > { %234 = vst [vmem:[%s2075_s30 + $0x30] sm:$0xff] %v233_v6  ;;  %236 = vst [vmem:[%s2075_s30 + $0x38] sm:$0xff] %v235_v7  ;;  %v239_v9 = vld [vmem:[%s2070_s29 + $0xc8] sm:$0xff]  ;;  %v241_v10 = vld [vmem:[%s2070_s29 + $0xf0] sm:$0xff] }
  0x14   : > { %238 = vst [vmem:[%s2075_s30 + $0x40] sm:$0xff] %v237_v8  ;;  %v243_v11 = vld [vmem:[%s2070_s29 + $0xf8] sm:$0xff]  ;;  %240 = vst [vmem:[%s2075_s30 + $0x48] sm:$0xff] %v239_v9  ;;  %v245_v12 = vld [vmem:[%s2070_s29 + $0x120] sm:$0xff] }
  0x15   : > { %242 = vst [vmem:[%s2075_s30 + $0x50] sm:$0xff] %v241_v10  ;;  %244 = vst [vmem:[%s2075_s30 + $0x58] sm:$0xff] %v243_v11  ;;  %v247_v13 = vld [vmem:[%s2070_s29 + $0x128] sm:$0xff]  ;;  %v249_v14 = vld [vmem:[%s2070_s29 + $0x150] sm:$0xff] }
  0x16   : > { %246 = vst [vmem:[%s2075_s30 + $0x60] sm:$0xff] %v245_v12  ;;  %248 = vst [vmem:[%s2075_s30 + $0x68] sm:$0xff] %v247_v13  ;;  %v251_v15 = vld [vmem:[%s2070_s29 + $0x158] sm:$0xff]  ;;  %v253_v16 = vld [vmem:[%s2070_s29 + $0x180] sm:$0xff] }
  0x17   : > { %250 = vst [vmem:[%s2075_s30 + $0x70] sm:$0xff] %v249_v14  ;;  %v255_v17 = vld [vmem:[%s2070_s29 + $0x188] sm:$0xff]  ;;  %252 = vst [vmem:[%s2075_s30 + $0x78] sm:$0xff] %v251_v15  ;;  %v257_v18 = vld [vmem:[%s2070_s29 + $0x1b0] sm:$0xff] }
  0x18   : > { %254 = vst [vmem:[%s2075_s30 + $0x80] sm:$0xff] %v253_v16  ;;  %256 = vst [vmem:[%s2075_s30 + $0x88] sm:$0xff] %v255_v17  ;;  %v259_v19 = vld [vmem:[%s2070_s29 + $0x1b8] sm:$0xff]  ;;  %v261_v20 = vld [vmem:[%s2070_s29 + $0x1e0] sm:$0xff] }
  0x19   : > { %258 = vst [vmem:[%s2075_s30 + $0x90] sm:$0xff] %v257_v18  ;;  %260 = vst [vmem:[%s2075_s30 + $0x98] sm:$0xff] %v259_v19  ;;  %v263_v21 = vld [vmem:[%s2070_s29 + $0x1e8] sm:$0xff]  ;;  %v265_v22 = vld [vmem:[%s2070_s29 + $0x210] sm:$0xff] }
  0x1a   : > { %262 = vst [vmem:[%s2075_s30 + $0xa0] sm:$0xff] %v261_v20  ;;  %v267_v23 = vld [vmem:[%s2070_s29 + $0x218] sm:$0xff]  ;;  %264 = vst [vmem:[%s2075_s30 + $0xa8] sm:$0xff] %v263_v21  ;;  %v269_v24 = vld [vmem:[%s2070_s29 + $0x240] sm:$0xff] }
  0x1b   : > { %266 = vst [vmem:[%s2075_s30 + $0xb0] sm:$0xff] %v265_v22  ;;  %268 = vst [vmem:[%s2075_s30 + $0xb8] sm:$0xff] %v267_v23  ;;  %v271_v25 = vld [vmem:[%s2070_s29 + $0x248] sm:$0xff]  ;;  %v273_v26 = vld [vmem:[%s2070_s29 + $0x270] sm:$0xff] }
  0x1c   : > { %270 = vst [vmem:[%s2075_s30 + $0xc0] sm:$0xff] %v269_v24  ;;  %272 = vst [vmem:[%s2075_s30 + $0xc8] sm:$0xff] %v271_v25  ;;  %v275_v27 = vld [vmem:[%s2070_s29 + $0x278] sm:$0xff]  ;;  %v277_v28 = vld [vmem:[%s2070_s29 + $0x2a0] sm:$0xff] }
  0x1d   : > { %274 = vst [vmem:[%s2075_s30 + $0xd0] sm:$0xff] %v273_v26  ;;  %v279_v29 = vld [vmem:[%s2070_s29 + $0x2a8] sm:$0xff]  ;;  %276 = vst [vmem:[%s2075_s30 + $0xd8] sm:$0xff] %v275_v27  ;;  %v281_v30 = vld [vmem:[%s2070_s29 + $0x2d0] sm:$0xff] }
  0x1e   : > { %278 = vst [vmem:[%s2075_s30 + $0xe0] sm:$0xff] %v277_v28  ;;  %280 = vst [vmem:[%s2075_s30 + $0xe8] sm:$0xff] %v279_v29  ;;  %v283_v31 = vld [vmem:[%s2070_s29 + $0x2d8] sm:$0xff] }
  0x1f   : > { %282 = vst [vmem:[%s2075_s30 + $0xf0] sm:$0xff] %v281_v30  ;;  %284 = vst [vmem:[%s2075_s30 + $0xf8] sm:$0xff] %v283_v31 }
  0x20 PF: > { %p1476_p6 = scmp.ge.s32.totalorder %s1999_s19, 1  ;;  %p301_p7 = scmp.lt.s32.totalorder %s1999_s19, 4 }
  0x22   : > { %p302_p8 = pnand %p1476_p6, %p301_p7 }
  0x23   : > { %s308_s5 = sand.u32 (!%p302_p8), 1, %s1983_s15   ;;  %s1478_s6 = sshll.u32 (!%p302_p8), %s1991_s17, 6 }
  0x24   : > { %305 = sbr.rel (%p302_p8) target bundleno = 410 (0x19a), region = 55  ;;  %s1477_s7 = sshll.u32 (!%p302_p8), %s308_s5, 8 }
  0x25   : > { %p353_p9 = scmp.lt.s32.totalorder (!%p302_p8), %s1478_s6, 191  ;;  %s2147_s12 = scalar_lea.vmem (!%p302_p8), [#allocation3], %s1477_s7 }
  0x26   : > { %p1480_p10 = scmp.ne.s32.totalorder (!%p302_p8), %s1991_s17, 0 }
  0x29   : > { %s2372_s6 = smov (!%p353_p9, %s1478_s6), 191  ;;  %380 = sbr.rel (%p1480_p10) target bundleno = 55 (0x37), region = 63 }
  0x2a   : > { %s1479_s8 = sshll.u32 %s2372_s6, 2 }
  0x2b   : > { %s2145_s11 = scalar_lea.vmem %s2361_s1, %s1479_s8 }
  0x2e   : > { %v2001_v32 = vmov 0.0  }
  0x2f   : > { %381 = vst [vmem:[#allocation2 + $0x30] sm:$0xff] %v2001_v32  ;;  %382 = vst [vmem:[#allocation2] sm:$0xff] %v2001_v32 }
  0x30   : > { %383 = vst [vmem:[#allocation2 + $0x58] sm:$0xff] %v2001_v32  ;;  %384 = vst [vmem:[#allocation2 + $0x18] sm:$0xff] %v2001_v32 }
  0x31   : > { %385 = vst [vmem:[#allocation2 + $0x50] sm:$0xff] %v2001_v32  ;;  %386 = vst [vmem:[#allocation2 + $0x68] sm:$0xff] %v2001_v32 }
  0x32   : > { %387 = vst [vmem:[#allocation2 + $0x8] sm:$0xff] %v2001_v32  ;;  %388 = vst [vmem:[#allocation2 + $0x48] sm:$0xff] %v2001_v32 }
  0x33   : > { %389 = vst [vmem:[#allocation2 + $0x40] sm:$0xff] %v2001_v32  ;;  %390 = vst [vmem:[#allocation2 + $0x20] sm:$0xff] %v2001_v32 }
  0x34   : > { %391 = vst [vmem:[#allocation2 + $0x10] sm:$0xff] %v2001_v32  ;;  %392 = vst [vmem:[#allocation2 + $0x38] sm:$0xff] %v2001_v32 }
  0x35   : > { %393 = vst [vmem:[#allocation2 + $0x60] sm:$0xff] %v2001_v32  ;;  %394 = vst [vmem:[#allocation2 + $0x70] sm:$0xff] %v2001_v32 }
  0x36   : > { %395 = vst [vmem:[#allocation2 + $0x78] sm:$0xff] %v2001_v32  ;;  %396 = vst [vmem:[#allocation2 + $0x28] sm:$0xff] %v2001_v32 }
  0x37 PF: > { %v1817_v33 = vld [vmem:[%s2145_s11 + $0x78] sm:$0xff]   ;;  %v1821_v37 = vld [vmem:[%s2145_s11 + $0x70] sm:$0xff]   ;;  %v1825_v41 = vld [vmem:[%s2145_s11 + $0x68] sm:$0xff]   ;;  %p1545_p11 = scmp.ne.s32.totalorder %s1991_s17, 2 }
  0x38   : > { %v1818_v34 = vld [vmem:[%s2145_s11 + $0xf8] sm:$0xff]   ;;  %1648 = vmatprep.subr.bf16.mxu0 %v1817_v33  ;;  %v1822_v38 = vld [vmem:[%s2145_s11 + $0xf0] sm:$0xff]   ;;  %v1826_v42 = vld [vmem:[%s2145_s11 + $0xe8] sm:$0xff]  }
  0x39   : > { %v1819_v35 = vld [vmem:[%s2145_s11 + $0x38] sm:$0xff]   ;;  %1712 = vmatprep.subr.bf16.mxu1 %v1818_v34  ;;  %v1823_v39 = vld [vmem:[%s2145_s11 + $0x30] sm:$0xff]   ;;  %v1827_v43 = vld [vmem:[%s2145_s11 + $0x28] sm:$0xff]  }
  0x3a   : > { %v1820_v36 = vld [vmem:[%s2145_s11 + $0xb8] sm:$0xff]   ;;  %1649 = vmatpush3.bf16.msra.mxu0 %v1819_v35  ;;  %v1824_v40 = vld [vmem:[%s2145_s11 + $0xb0] sm:$0xff]   ;;  %v1828_v44 = vld [vmem:[%s2145_s11 + $0xa8] sm:$0xff]  }
  0x3b   : > { %1713 = vmatpush3.bf16.msra.mxu1 %v1820_v36  ;;  %1650 = vmatprep.subr.bf16.mxu0 %v1821_v37  ;;  %v1829_v45 = vld [vmem:[%s2145_s11 + $0x60] sm:$0xff]   ;;  %v1833_v49 = vld [vmem:[%s2145_s11 + $0x58] sm:$0xff]   ;;  %v1837_v53 = vld [vmem:[%s2145_s11 + $0x50] sm:$0xff]  }
  0x3c   : > { %1714 = vmatprep.subr.bf16.mxu1 %v1822_v38  ;;  %v1830_v46 = vld [vmem:[%s2145_s11 + $0xe0] sm:$0xff]   ;;  %v1834_v50 = vld [vmem:[%s2145_s11 + $0xd8] sm:$0xff]   ;;  %v1838_v54 = vld [vmem:[%s2145_s11 + $0xd0] sm:$0xff]  }
  0x3d   : > { %v1831_v47 = vld [vmem:[%s2145_s11 + $0x20] sm:$0xff]   ;;  %v1835_v51 = vld [vmem:[%s2145_s11 + $0x18] sm:$0xff]   ;;  %v1839_v55 = vld [vmem:[%s2145_s11 + $0x10] sm:$0xff]  }
  0x3e   : > { %1651 = vmatpush3.bf16.msra.mxu0 %v1823_v39  ;;  %v1832_v48 = vld [vmem:[%s2145_s11 + $0xa0] sm:$0xff]   ;;  %v1836_v52 = vld [vmem:[%s2145_s11 + $0x98] sm:$0xff]   ;;  %v1840_v56 = vld [vmem:[%s2145_s11 + $0x90] sm:$0xff]  }
  0x3f   : > { %1715 = vmatpush3.bf16.msra.mxu1 %v1824_v40  ;;  %1652 = vmatprep.subr.bf16.mxu0 %v1825_v41  ;;  %v1841_v57 = vld [vmem:[%s2145_s11 + $0x48] sm:$0xff]   ;;  %v1845_v61 = vld [vmem:[%s2145_s11 + $0x40] sm:$0xff]   ;;  %v397_v40 = vld [vmem:[#allocation2 + $0x30] sm:$0xff] }
  0x40   : > { %1716 = vmatprep.subr.bf16.mxu1 %v1826_v42  ;;  %v1842_v58 = vld [vmem:[%s2145_s11 + $0xc8] sm:$0xff]   ;;  %v1846_v62 = vld [vmem:[%s2145_s11 + $0xc0] sm:$0xff]  }
  0x41   : > { %v1843_v59 = vld [vmem:[%s2145_s11 + $0x8] sm:$0xff]   ;;  %v1847_v63 = vld [vmem:[%s2145_s11] sm:$0xff]  }
  0x42   : > { %1653 = vmatpush3.bf16.msra.mxu0 %v1827_v43  ;;  %v1844_v60 = vld [vmem:[%s2145_s11 + $0x88] sm:$0xff]   ;;  %v1848_v0 = vld [vmem:[%s2145_s11 + $0x80] sm:$0xff]  }
  0x43   : > { %1717 = vmatpush3.bf16.msra.mxu1 %v1828_v44  ;;  %1654 = vmatprep.subr.bf16.mxu0 %v1829_v45  ;;  %v1849_v1 = vld [vmem:[%s2147_s12] ss:$16 sps:$4 sm:$0xff]   ;;  %v1851_v2 = vld [vmem:[%s2147_s12 + $0x4] ss:$16 sps:$4 sm:$0xff]   ;;  %v1852_v3 = vld [vmem:[%s2147_s12 + $0x8] ss:$16 sps:$4 sm:$0xff]  }
  0x44   : > { %1718 = vmatprep.subr.bf16.mxu1 %v1830_v46  ;;  %v1854_v4 = vld [vmem:[%s2147_s12 + $0xc] ss:$16 sps:$4 sm:$0xff]   ;;  %893 = vmatprep.mubr.bf16.mxu0 %v1851_v2  ;;  %v1855_v5 = vld [vmem:[%s2147_s12 + $0x24] ss:$16 sps:$4 sm:$0xff]   ;;  %v1859_v7 = vld [vmem:[%s2147_s12 + $0x20] ss:$16 sps:$4 sm:$0xff]  }
  0x45   : > { %990 = vmatprep.mubr.bf16.mxu1 %v1854_v4  ;;  %v1857_v6 = vld [vmem:[%s2147_s12 + $0x2c] ss:$16 sps:$4 sm:$0xff]   ;;  %v1860_v8 = vld [vmem:[%s2147_s12 + $0x28] ss:$16 sps:$4 sm:$0xff]   ;;  %v1861_v9 = vld [vmem:[%s2147_s12 + $0x44] ss:$16 sps:$4 sm:$0xff]  }
  0x46   : > { %1655 = vmatpush3.bf16.msra.mxu0 %v1831_v47  ;;  %v1863_v10 = vld [vmem:[%s2147_s12 + $0x4c] ss:$16 sps:$4 sm:$0xff]   ;;  %v1865_v11 = vld [vmem:[%s2147_s12 + $0x40] ss:$16 sps:$4 sm:$0xff]   ;;  %v1866_v12 = vld [vmem:[%s2147_s12 + $0x48] ss:$16 sps:$4 sm:$0xff]  }
  0x47   : > { %1719 = vmatpush3.bf16.msra.mxu1 %v1832_v48  ;;  %1656 = vmatprep.subr.bf16.mxu0 %v1833_v49  ;;  %v1867_v13 = vld [vmem:[%s2147_s12 + $0x64] ss:$16 sps:$4 sm:$0xff]   ;;  %v1869_v14 = vld [vmem:[%s2147_s12 + $0x6c] ss:$16 sps:$4 sm:$0xff]   ;;  %v1871_v15 = vld [vmem:[%s2147_s12 + $0x60] ss:$16 sps:$4 sm:$0xff]  }
  0x48   : > { %1720 = vmatprep.subr.bf16.mxu1 %v1834_v50  ;;  %v1872_v16 = vld [vmem:[%s2147_s12 + $0x68] ss:$16 sps:$4 sm:$0xff]   ;;  %v1873_v17 = vld [vmem:[%s2147_s12 + $0x84] ss:$16 sps:$4 sm:$0xff]   ;;  %v1875_v18 = vld [vmem:[%s2147_s12 + $0x8c] ss:$16 sps:$4 sm:$0xff]  }
  0x49   : > { %v1877_v19 = vld [vmem:[%s2147_s12 + $0x80] ss:$16 sps:$4 sm:$0xff]   ;;  %v1878_v20 = vld [vmem:[%s2147_s12 + $0x88] ss:$16 sps:$4 sm:$0xff]   ;;  %v1879_v21 = vld [vmem:[%s2147_s12 + $0xa4] ss:$16 sps:$4 sm:$0xff]  }
  0x4a   : > { %1657 = vmatpush3.bf16.msra.mxu0 %v1835_v51  ;;  %v1881_v22 = vld [vmem:[%s2147_s12 + $0xac] ss:$16 sps:$4 sm:$0xff]   ;;  %v1883_v23 = vld [vmem:[%s2147_s12 + $0xa0] ss:$16 sps:$4 sm:$0xff]   ;;  %v1884_v24 = vld [vmem:[%s2147_s12 + $0xa8] ss:$16 sps:$4 sm:$0xff]  }
  0x4b   : > { %1721 = vmatpush3.bf16.msra.mxu1 %v1836_v52  ;;  %1658 = vmatprep.subr.bf16.mxu0 %v1837_v53  ;;  %v1885_v25 = vld [vmem:[%s2147_s12 + $0xc4] ss:$16 sps:$4 sm:$0xff]   ;;  %v1887_v26 = vld [vmem:[%s2147_s12 + $0xcc] ss:$16 sps:$4 sm:$0xff]   ;;  %v1889_v27 = vld [vmem:[%s2147_s12 + $0xc0] ss:$16 sps:$4 sm:$0xff]  }
  0x4c   : > { %1722 = vmatprep.subr.bf16.mxu1 %v1838_v54  ;;  %v1890_v28 = vld [vmem:[%s2147_s12 + $0xc8] ss:$16 sps:$4 sm:$0xff]   ;;  %v1891_v29 = vld [vmem:[%s2147_s12 + $0xe4] ss:$16 sps:$4 sm:$0xff]   ;;  %v1893_v30 = vld [vmem:[%s2147_s12 + $0xec] ss:$16 sps:$4 sm:$0xff]  }
  0x4d   : > { %v1895_v31 = vld [vmem:[%s2147_s12 + $0xe0] ss:$16 sps:$4 sm:$0xff]   ;;  %v1896_v32 = vld [vmem:[%s2147_s12 + $0xe8] ss:$16 sps:$4 sm:$0xff]  }
  0x4e   : > { %1659 = vmatpush3.bf16.msra.mxu0 %v1839_v55  ;;  %v398_v49 = vld [vmem:[#allocation2] sm:$0xff] }
  0x4f   : > { %1723 = vmatpush3.bf16.msra.mxu1 %v1840_v56  ;;  %1660 = vmatprep.subr.bf16.mxu0 %v1841_v57 }
  0x50   : > { %1724 = vmatprep.subr.bf16.mxu1 %v1842_v58  ;;  %v399_v58 = vld [vmem:[#allocation2 + $0x58] sm:$0xff] }
  0x52   : > { %1661 = vmatpush3.bf16.msra.mxu0 %v1843_v59 }
  0x53   : > { %1725 = vmatpush3.bf16.msra.mxu1 %v1844_v60  ;;  %1662 = vmatprep.subr.bf16.mxu0 %v1845_v61 }
  0x54   : > { %1726 = vmatprep.subr.bf16.mxu1 %v1846_v62 }
  0x56   : > { %1663 = vmatpush3.bf16.msra.mxu0 %v1847_v63 }
  0x57   : > { %1727 = vmatpush3.bf16.msra.mxu1 %v1848_v0 }
  0x59   : > { %894 = vmatmul.mubr.bf16.vlgmr.msra.gmra.mxu0 %v1849_v1 }
  0x5a   : > { %991 = vmatmul.mubr.bf16.vlgmr.msra.gmra.mxu1 %v1852_v3  ;;  %901 = vmatprep.mubr.bf16.mxu0 %v1855_v5  ;;  %v400_v3 = vld [vmem:[#allocation2 + $0x18] sm:$0xff] }
  0x5b   : > { %998 = vmatprep.mubr.bf16.mxu1 %v1857_v6 }
  0x61   : > { %902 = vmatmul.mubr.bf16.gmra.mxu0 %v1859_v7 }
  0x62   : > { %999 = vmatmul.mubr.bf16.gmra.mxu1 %v1860_v8  ;;  %909 = vmatprep.mubr.bf16.mxu0 %v1861_v9 }
  0x63   : > { %1006 = vmatprep.mubr.bf16.mxu1 %v1863_v10 }
  0x69   : > { %910 = vmatmul.mubr.bf16.gmra.mxu0 %v1865_v11 }
  0x6a   : > { %1007 = vmatmul.mubr.bf16.gmra.mxu1 %v1866_v12  ;;  %917 = vmatprep.mubr.bf16.mxu0 %v1867_v13  ;;  %v401_v12 = vld [vmem:[#allocation2 + $0x50] sm:$0xff] }
  0x6b   : > { %1014 = vmatprep.mubr.bf16.mxu1 %v1869_v14 }
  0x71   : > { %918 = vmatmul.mubr.bf16.gmra.mxu0 %v1871_v15 }
  0x72   : > { %1015 = vmatmul.mubr.bf16.gmra.mxu1 %v1872_v16  ;;  %925 = vmatprep.mubr.bf16.mxu0 %v1873_v17 }
  0x73   : > { %1022 = vmatprep.mubr.bf16.mxu1 %v1875_v18 }
  0x79   : > { %926 = vmatmul.mubr.bf16.gmra.mxu0 %v1877_v19 }
  0x7a   : > { %1023 = vmatmul.mubr.bf16.gmra.mxu1 %v1878_v20  ;;  %933 = vmatprep.mubr.bf16.mxu0 %v1879_v21  ;;  %v402_v21 = vld [vmem:[#allocation2 + $0x68] sm:$0xff] }
  0x7b   : > { %1030 = vmatprep.mubr.bf16.mxu1 %v1881_v22 }
  0x81   : > { %934 = vmatmul.mubr.bf16.gmra.mxu0 %v1883_v23 }
  0x82   : > { %1031 = vmatmul.mubr.bf16.gmra.mxu1 %v1884_v24  ;;  %941 = vmatprep.mubr.bf16.mxu0 %v1885_v25 }
  0x83   : > { %1038 = vmatprep.mubr.bf16.mxu1 %v1887_v26 }
  0x89   : > { %942 = vmatmul.mubr.bf16.gmra.mxu0 %v1889_v27 }
  0x8a   : > { %1039 = vmatmul.mubr.bf16.gmra.mxu1 %v1890_v28  ;;  %949 = vmatprep.mubr.bf16.mxu0 %v1891_v29 }
  0x8b   : > { %1046 = vmatprep.mubr.bf16.mxu1 %v1893_v30  ;;  %v403_v30 = vld [vmem:[#allocation2 + $0x8] sm:$0xff] }
  0x91   : > { %950 = vmatmul.mubr.bf16.gmra.mxu0 %v1895_v31 }
  0x92   : > { %1047 = vmatmul.mubr.bf16.gmra.mxu1 %v1896_v32 }
 0x119   : > { %v1664_v33 = vpop.f32.mrf.mxu0 }
 0x11a   : > { %v1728_v34 = vpop.f32.mrf.mxu1 }
 0x11b   : > { %v1665_v35 = vpop.f32.mrf.mxu0 }
 0x11c   : > { %v1666_v36 = vadd.f32 %v1665_v35, %v1664_v33  ;;  %v1729_v37 = vpop.f32.mrf.mxu1 }
 0x11d   : > { %v1730_v38 = vadd.f32 %v1729_v37, %v1728_v34  ;;  %v1667_v39 = vpop.f32.mrf.mxu0 }
 0x11e   : > { %v1731_v41 = vpop.f32.mrf.mxu1 }
 0x11f   : > { %v993_v42 = vadd.f32 %v1730_v38, %v1666_v36  ;;  %v1668_v43 = vpop.f32.mrf.mxu0 }
 0x120   : > { %v1669_v44 = vadd.f32 %v1668_v43, %v1667_v39  ;;  %v1732_v45 = vpop.f32.mrf.mxu1  ;;  %v404_v39 = vld [vmem:[#allocation2 + $0x48] sm:$0xff] }
 0x121   : > { %v1055_v46 = vadd.f32 %v993_v42, %v397_v40  ;;  %v1733_v47 = vadd.f32 %v1732_v45, %v1731_v41  ;;  %v1670_v48 = vpop.f32.mrf.mxu0 }
 0x122   : > { %v1734_v50 = vpop.f32.mrf.mxu1 }
 0x123   : > { %1071 = vst [vmem:[#allocation2 + $0x30] sm:$0xff] %v1055_v46  ;;  %v996_v51 = vadd.f32 %v1733_v47, %v1669_v44  ;;  %v1671_v52 = vpop.f32.mrf.mxu0 }
 0x124   : > { %v1672_v53 = vadd.f32 %v1671_v52, %v1670_v48  ;;  %v1735_v54 = vpop.f32.mrf.mxu1  ;;  %v405_v48 = vld [vmem:[#allocation2 + $0x40] sm:$0xff] }
 0x125   : > { %v1056_v55 = vadd.f32 %v996_v51, %v398_v49  ;;  %v1736_v56 = vadd.f32 %v1735_v54, %v1734_v50  ;;  %v1673_v57 = vpop.f32.mrf.mxu0 }
 0x126   : > { %v1737_v59 = vpop.f32.mrf.mxu1 }
 0x127   : > { %1072 = vst [vmem:[#allocation2] sm:$0xff] %v1056_v55  ;;  %v1001_v60 = vadd.f32 %v1736_v56, %v1672_v53  ;;  %v1674_v61 = vpop.f32.mrf.mxu0 }
 0x128   : > { %v1675_v62 = vadd.f32 %v1674_v61, %v1673_v57  ;;  %v1738_v63 = vpop.f32.mrf.mxu1  ;;  %v406_v57 = vld [vmem:[#allocation2 + $0x20] sm:$0xff] }
 0x129   : > { %v1057_v0 = vadd.f32 %v1001_v60, %v399_v58  ;;  %v1739_v1 = vadd.f32 %v1738_v63, %v1737_v59  ;;  %v1676_v2 = vpop.f32.mrf.mxu0 }
 0x12a   : > { %v1740_v4 = vpop.f32.mrf.mxu1 }
 0x12b   : > { %1073 = vst [vmem:[#allocation2 + $0x58] sm:$0xff] %v1057_v0  ;;  %v1004_v5 = vadd.f32 %v1739_v1, %v1675_v62  ;;  %v1677_v6 = vpop.f32.mrf.mxu0 }
 0x12c   : > { %v1678_v7 = vadd.f32 %v1677_v6, %v1676_v2  ;;  %v1741_v8 = vpop.f32.mrf.mxu1  ;;  %v407_v2 = vld [vmem:[#allocation2 + $0x10] sm:$0xff] }
 0x12d   : > { %v1058_v9 = vadd.f32 %v1004_v5, %v400_v3  ;;  %v1742_v10 = vadd.f32 %v1741_v8, %v1740_v4  ;;  %v1679_v11 = vpop.f32.mrf.mxu0 }
 0x12e   : > { %v1743_v13 = vpop.f32.mrf.mxu1 }
 0x12f   : > { %1074 = vst [vmem:[#allocation2 + $0x18] sm:$0xff] %v1058_v9  ;;  %v1009_v14 = vadd.f32 %v1742_v10, %v1678_v7  ;;  %v1680_v15 = vpop.f32.mrf.mxu0 }
 0x130   : > { %v1681_v16 = vadd.f32 %v1680_v15, %v1679_v11  ;;  %v1744_v17 = vpop.f32.mrf.mxu1  ;;  %v408_v11 = vld [vmem:[#allocation2 + $0x38] sm:$0xff] }
 0x131   : > { %v1059_v18 = vadd.f32 %v1009_v14, %v401_v12  ;;  %v1745_v19 = vadd.f32 %v1744_v17, %v1743_v13  ;;  %v1682_v20 = vpop.f32.mrf.mxu0 }
 0x132   : > { %v1746_v22 = vpop.f32.mrf.mxu1 }
 0x133   : > { %1075 = vst [vmem:[#allocation2 + $0x50] sm:$0xff] %v1059_v18  ;;  %v1012_v23 = vadd.f32 %v1745_v19, %v1681_v16  ;;  %v1683_v24 = vpop.f32.mrf.mxu0 }
 0x134   : > { %v1684_v25 = vadd.f32 %v1683_v24, %v1682_v20  ;;  %v1747_v26 = vpop.f32.mrf.mxu1  ;;  %v409_v20 = vld [vmem:[#allocation2 + $0x60] sm:$0xff] }
 0x135   : > { %v1060_v27 = vadd.f32 %v1012_v23, %v402_v21  ;;  %v1748_v28 = vadd.f32 %v1747_v26, %v1746_v22  ;;  %v1685_v29 = vpop.f32.mrf.mxu0 }
 0x136   : > { %v1749_v31 = vpop.f32.mrf.mxu1 }
 0x137   : > { %1076 = vst [vmem:[#allocation2 + $0x68] sm:$0xff] %v1060_v27  ;;  %v1017_v32 = vadd.f32 %v1748_v28, %v1684_v25  ;;  %v1686_v33 = vpop.f32.mrf.mxu0 }
 0x138   : > { %v1687_v34 = vadd.f32 %v1686_v33, %v1685_v29  ;;  %v1750_v35 = vpop.f32.mrf.mxu1  ;;  %v410_v29 = vld [vmem:[#allocation2 + $0x70] sm:$0xff] }
 0x139   : > { %v1061_v36 = vadd.f32 %v1017_v32, %v403_v30  ;;  %v1751_v37 = vadd.f32 %v1750_v35, %v1749_v31  ;;  %v1688_v38 = vpop.f32.mrf.mxu0 }
 0x13a   : > { %v1752_v40 = vpop.f32.mrf.mxu1 }
 0x13b   : > { %1077 = vst [vmem:[#allocation2 + $0x8] sm:$0xff] %v1061_v36  ;;  %v1020_v41 = vadd.f32 %v1751_v37, %v1687_v34  ;;  %v1689_v42 = vpop.f32.mrf.mxu0 }
 0x13c   : > { %v1690_v43 = vadd.f32 %v1689_v42, %v1688_v38  ;;  %v1753_v44 = vpop.f32.mrf.mxu1  ;;  %v411_v38 = vld [vmem:[#allocation2 + $0x78] sm:$0xff] }
 0x13d   : > { %v1062_v45 = vadd.f32 %v1020_v41, %v404_v39  ;;  %v1754_v46 = vadd.f32 %v1753_v44, %v1752_v40  ;;  %v1691_v47 = vpop.f32.mrf.mxu0 }
 0x13e   : > { %v1755_v49 = vpop.f32.mrf.mxu1 }
 0x13f   : > { %1078 = vst [vmem:[#allocation2 + $0x48] sm:$0xff] %v1062_v45  ;;  %v1025_v50 = vadd.f32 %v1754_v46, %v1690_v43  ;;  %v1692_v51 = vpop.f32.mrf.mxu0  ;;  %v412_v46 = vld [vmem:[#allocation2 + $0x28] sm:$0xff] }
 0x140   : > { %v1693_v52 = vadd.f32 %v1692_v51, %v1691_v47  ;;  %v1756_v53 = vpop.f32.mrf.mxu1 }
 0x141   : > { %v1063_v54 = vadd.f32 %v1025_v50, %v405_v48  ;;  %v1757_v55 = vadd.f32 %v1756_v53, %v1755_v49  ;;  %v1694_v56 = vpop.f32.mrf.mxu0 }
 0x142   : > { %v1758_v58 = vpop.f32.mrf.mxu1 }
 0x143   : > { %1079 = vst [vmem:[#allocation2 + $0x40] sm:$0xff] %v1063_v54  ;;  %v1028_v59 = vadd.f32 %v1757_v55, %v1693_v52  ;;  %v1695_v60 = vpop.f32.mrf.mxu0 }
 0x144   : > { %v1696_v61 = vadd.f32 %v1695_v60, %v1694_v56  ;;  %v1759_v62 = vpop.f32.mrf.mxu1 }
 0x145   : > { %v1064_v63 = vadd.f32 %v1028_v59, %v406_v57  ;;  %v1760_v0 = vadd.f32 %v1759_v62, %v1758_v58  ;;  %v1697_v1 = vpop.f32.mrf.mxu0 }
 0x146   : > { %v1761_v3 = vpop.f32.mrf.mxu1 }
 0x147   : > { %1080 = vst [vmem:[#allocation2 + $0x20] sm:$0xff] %v1064_v63  ;;  %v1033_v4 = vadd.f32 %v1760_v0, %v1696_v61  ;;  %v1698_v5 = vpop.f32.mrf.mxu0 }
 0x148   : > { %v1699_v6 = vadd.f32 %v1698_v5, %v1697_v1  ;;  %v1762_v7 = vpop.f32.mrf.mxu1 }
 0x149   : > { %v1065_v8 = vadd.f32 %v1033_v4, %v407_v2  ;;  %v1763_v9 = vadd.f32 %v1762_v7, %v1761_v3  ;;  %v1700_v10 = vpop.f32.mrf.mxu0 }
 0x14a   : > { %v1764_v12 = vpop.f32.mrf.mxu1 }
 0x14b   : > { %1081 = vst [vmem:[#allocation2 + $0x10] sm:$0xff] %v1065_v8  ;;  %v1036_v13 = vadd.f32 %v1763_v9, %v1699_v6  ;;  %v1701_v14 = vpop.f32.mrf.mxu0 }
 0x14c   : > { %v1702_v15 = vadd.f32 %v1701_v14, %v1700_v10  ;;  %v1765_v16 = vpop.f32.mrf.mxu1 }
 0x14d   : > { %v1066_v17 = vadd.f32 %v1036_v13, %v408_v11  ;;  %v1766_v18 = vadd.f32 %v1765_v16, %v1764_v12  ;;  %v1703_v19 = vpop.f32.mrf.mxu0 }
 0x14e   : > { %v1767_v21 = vpop.f32.mrf.mxu1 }
 0x14f   : > { %1082 = vst [vmem:[#allocation2 + $0x38] sm:$0xff] %v1066_v17  ;;  %v1041_v22 = vadd.f32 %v1766_v18, %v1702_v15  ;;  %v1704_v23 = vpop.f32.mrf.mxu0 }
 0x150   : > { %v1705_v24 = vadd.f32 %v1704_v23, %v1703_v19  ;;  %v1768_v25 = vpop.f32.mrf.mxu1 }
 0x151   : > { %v1067_v26 = vadd.f32 %v1041_v22, %v409_v20  ;;  %v1769_v27 = vadd.f32 %v1768_v25, %v1767_v21  ;;  %v1706_v28 = vpop.f32.mrf.mxu0 }
 0x152   : > { %v1770_v30 = vpop.f32.mrf.mxu1 }
 0x153   : > { %1083 = vst [vmem:[#allocation2 + $0x60] sm:$0xff] %v1067_v26  ;;  %v1044_v31 = vadd.f32 %v1769_v27, %v1705_v24  ;;  %v1707_v32 = vpop.f32.mrf.mxu0 }
 0x154   : > { %v1708_v33 = vadd.f32 %v1707_v32, %v1706_v28  ;;  %v1771_v34 = vpop.f32.mrf.mxu1 }
 0x155   : > { %v1068_v35 = vadd.f32 %v1044_v31, %v410_v29  ;;  %v1772_v36 = vadd.f32 %v1771_v34, %v1770_v30  ;;  %v1709_v37 = vpop.f32.mrf.mxu0 }
 0x156   : > { %v1773_v39 = vpop.f32.mrf.mxu1 }
 0x157   : > { %1084 = vst [vmem:[#allocation2 + $0x70] sm:$0xff] %v1068_v35  ;;  %v1049_v40 = vadd.f32 %v1772_v36, %v1708_v33  ;;  %v1710_v41 = vpop.f32.mrf.mxu0 }
 0x158   : > { %v1711_v42 = vadd.f32 %v1710_v41, %v1709_v37  ;;  %v1774_v43 = vpop.f32.mrf.mxu1 }
 0x159   : > { %v1069_v44 = vadd.f32 %v1049_v40, %v411_v38  ;;  %v1775_v45 = vadd.f32 %v1774_v43, %v1773_v39 }
 0x15b   : > { %1085 = vst [vmem:[#allocation2 + $0x78] sm:$0xff] %v1069_v44  ;;  %v1052_v47 = vadd.f32 %v1775_v45, %v1711_v42  ;;  %1090 = sbr.rel (%p1545_p11) target bundleno = 410 (0x19a), region = 67 }
 0x15d   : > { %v1070_v48 = vadd.f32 %v1052_v47, %v412_v46 }
 0x15f   : > { %1086 = vst [vmem:[#allocation2 + $0x28] sm:$0xff] %v1070_v48 }
 0x160   : > { %v1091_v49 = vld [vmem:[#allocation2 + $0x30] sm:$0xff]  ;;  %v1092_v50 = vld [vmem:[#allocation2] sm:$0xff]  ;;  %v1093_v55 = vld [vmem:[#allocation2 + $0x58] sm:$0xff] }
 0x161   : > { %v2218_v51 = vld [vmem:[%s2362_s2] ss:$0 sm:$0xff]  ;;  %v1094_v56 = vld [vmem:[#allocation2 + $0x18] sm:$0xff]  ;;  %v1095_v59 = vld [vmem:[#allocation2 + $0x50] sm:$0xff] }
 0x162   : > { %v1114_v52 = vmul.f32 %v2218_v51, %v1091_v49  ;;  %v1115_v53 = vmul.f32 %v2218_v51, %v1092_v50  ;;  %v2225_v54 = vld [vmem:[%s2363_s3] ss:$0 sm:$0xff]  ;;  %v1116_v57 = vmul.f32 %v2218_v51, %v1093_v55  ;;  %v1117_v58 = vmul.f32 %v2218_v51, %v1094_v56  ;;  %v1096_v60 = vld [vmem:[#allocation2 + $0x68] sm:$0xff]  ;;  %v1101_v17 = vld [vmem:[#allocation2 + $0x10] sm:$0xff] }
 0x163   : > { %v1097_v61 = vld [vmem:[#allocation2 + $0x8] sm:$0xff]  ;;  %v1118_v0 = vmul.f32 %v2218_v51, %v1095_v59  ;;  %v1119_v1 = vmul.f32 %v2218_v51, %v1096_v60  ;;  %v1099_v7 = vld [vmem:[#allocation2 + $0x40] sm:$0xff]  ;;  %v1102_v18 = vld [vmem:[#allocation2 + $0x38] sm:$0xff]  ;;  %v1124_v28 = vmul.f32 %v2218_v51, %v1101_v17 }
 0x164   : > { %v2230_v62 = vadd.f32 %v2225_v54, %v1114_v52  ;;  %v2233_v63 = vadd.f32 %v2225_v54, %v1115_v53  ;;  %v1098_v2 = vld [vmem:[#allocation2 + $0x48] sm:$0xff]  ;;  %v2238_v3 = vadd.f32 %v2225_v54, %v1116_v57  ;;  %v2241_v4 = vadd.f32 %v2225_v54, %v1117_v58  ;;  %v1100_v12 = vld [vmem:[#allocation2 + $0x20] sm:$0xff]  ;;  %v1104_v23 = vld [vmem:[#allocation2 + $0x70] sm:$0xff] }
 0x165   : > { %v1120_v5 = vmul.f32 %v2218_v51, %v1097_v61  ;;  %v1121_v6 = vmul.f32 %v2218_v51, %v1098_v2  ;;  %v2248_v10 = vadd.f32 %v2225_v54, %v1118_v0  ;;  %v2251_v11 = vadd.f32 %v2225_v54, %v1119_v1  ;;  %v1103_v22 = vld [vmem:[#allocation2 + $0x60] sm:$0xff]  ;;  %v1105_v33 = vld [vmem:[#allocation2 + $0x78] sm:$0xff] }
 0x166   : > { %v1548_v8 = vmul.f32 -1.442695, %v2230_v62  ;;  %v1549_v9 = vmul.f32 -1.442695, %v2233_v63  ;;  %v1550_v13 = vmul.f32 -1.442695, %v2238_v3  ;;  %v1122_v21 = vmul.f32 %v2218_v51, %v1099_v7 }
 0x167   : > { %v1551_v14 = vmul.f32 -1.442695, %v2241_v4  ;;  %v2256_v15 = vadd.f32 %v2225_v54, %v1120_v5  ;;  %v2259_v16 = vadd.f32 %v2225_v54, %v1121_v6  ;;  %v1552_v19 = vmul.f32 -1.442695, %v2248_v10  ;;  %v1106_v37 = vld [vmem:[#allocation2 + $0x28] sm:$0xff] }
 0x168   : > { %1897 = vpow2.f32 %v1548_v8  ;;  %v1553_v20 = vmul.f32 -1.442695, %v2251_v11  ;;  %v1123_v26 = vmul.f32 %v2218_v51, %v1100_v12  ;;  %v2268_v27 = vadd.f32 %v2225_v54, %v1122_v21 }
 0x169   : > { %1899 = vpow2.f32 %v1549_v9  ;;  %v1554_v24 = vmul.f32 -1.442695, %v2256_v15  ;;  %v1555_v25 = vmul.f32 -1.442695, %v2259_v16  ;;  %v1125_v29 = vmul.f32 %v2218_v51, %v1102_v18 }
 0x16a   : > { %1901 = vpow2.f32 %v1550_v13  ;;  %v2273_v30 = vadd.f32 %v2225_v54, %v1123_v26  ;;  %v1126_v31 = vmul.f32 %v2218_v51, %v1103_v22  ;;  %v1127_v32 = vmul.f32 %v2218_v51, %v1104_v23 }
 0x16b   : > { %1903 = vpow2.f32 %v1551_v14  ;;  %v1556_v34 = vmul.f32 -1.442695, %v2268_v27  ;;  %v2279_v35 = vadd.f32 %v2225_v54, %v1124_v28  ;;  %v2282_v36 = vadd.f32 %v2225_v54, %v1125_v29 }
 0x16c   : > { %1905 = vpow2.f32 %v1552_v19  ;;  %v1557_v38 = vmul.f32 -1.442695, %v2273_v30  ;;  %v2286_v39 = vadd.f32 %v2225_v54, %v1126_v31  ;;  %v2289_v40 = vadd.f32 %v2225_v54, %v1127_v32 }
 0x16d   : > { %1907 = vpow2.f32 %v1553_v20  ;;  %v1558_v41 = vmul.f32 -1.442695, %v2279_v35  ;;  %v1128_v42 = vmul.f32 %v2218_v51, %v1105_v33  ;;  %v1559_v43 = vmul.f32 -1.442695, %v2282_v36 }
 0x16e   : > { %1909 = vpow2.f32 %v1554_v24  ;;  %v1129_v44 = vmul.f32 %v2218_v51, %v1106_v37  ;;  %v1560_v45 = vmul.f32 -1.442695, %v2286_v39  ;;  %v1561_v47 = vmul.f32 -1.442695, %v2289_v40 }
 0x16f   : > { %1911 = vpow2.f32 %v1555_v25  ;;  %v2297_v46 = vadd.f32 %v2225_v54, %v1128_v42 }
 0x170   : > { %1913 = vpow2.f32 %v1556_v34  ;;  %v2301_v48 = vadd.f32 %v2225_v54, %v1129_v44 }
 0x171   : > { %1915 = vpow2.f32 %v1557_v38  ;;  %v1562_v49 = vmul.f32 -1.442695, %v2297_v46 }
 0x172   : > { %1917 = vpow2.f32 %v1558_v41  ;;  %v1563_v50 = vmul.f32 -1.442695, %v2301_v48 }
 0x173   : > { %1919 = vpow2.f32 %v1559_v43 }
 0x174   : > { %1921 = vpow2.f32 %v1560_v45 }
 0x175   : > { %v1898_v51 = vpop.eup %1897  ;;  %1923 = vpow2.f32 %v1561_v47 }
 0x176   : > { %v1900_v52 = vpop.eup %1899  ;;  %v1201_v53 = vadd.f32 1.0, %v1898_v51  ;;  %1925 = vpow2.f32 %v1562_v49 }
 0x177   : > { %v1902_v55 = vpop.eup %1901  ;;  %v1202_v56 = vadd.f32 1.0, %v1900_v52  ;;  %1927 = vpow2.f32 %v1563_v50 }
 0x178   : > { %v1904_v57 = vpop.eup %1903  ;;  %1929 = vrcp.f32 %v1201_v53  ;;  %v1203_v58 = vadd.f32 1.0, %v1902_v55 }
 0x179   : > { %v1906_v54 = vpop.eup %1905  ;;  %1931 = vrcp.f32 %v1202_v56  ;;  %v1204_v59 = vadd.f32 1.0, %v1904_v57 }
 0x17a   : > { %v1908_v60 = vpop.eup %1907  ;;  %1933 = vrcp.f32 %v1203_v58  ;;  %v1205_v61 = vadd.f32 1.0, %v1906_v54 }
 0x17b   : > { %v1910_v0 = vpop.eup %1909  ;;  %1935 = vrcp.f32 %v1204_v59  ;;  %v1206_v1 = vadd.f32 1.0, %v1908_v60 }
 0x17c   : > { %v1912_v2 = vpop.eup %1911  ;;  %1937 = vrcp.f32 %v1205_v61  ;;  %v1207_v5 = vadd.f32 1.0, %v1910_v0 }
 0x17d   : > { %v1914_v6 = vpop.eup %1913  ;;  %1939 = vrcp.f32 %v1206_v1  ;;  %v1208_v7 = vadd.f32 1.0, %v1912_v2 }
 0x17e   : > { %v1916_v8 = vpop.eup %1915  ;;  %1941 = vrcp.f32 %v1207_v5  ;;  %v1209_v9 = vadd.f32 1.0, %v1914_v6 }
 0x17f   : > { %v1918_v12 = vpop.eup %1917  ;;  %1943 = vrcp.f32 %v1208_v7  ;;  %v1210_v13 = vadd.f32 1.0, %v1916_v8 }
 0x180   : > { %v1920_v14 = vpop.eup %1919  ;;  %1945 = vrcp.f32 %v1209_v9  ;;  %v1211_v17 = vadd.f32 1.0, %v1918_v12 }
 0x181   : > { %v1922_v18 = vpop.eup %1921  ;;  %1947 = vrcp.f32 %v1210_v13  ;;  %v1212_v19 = vadd.f32 1.0, %v1920_v14 }
 0x182   : > { %v1924_v20 = vpop.eup %1923  ;;  %1949 = vrcp.f32 %v1211_v17  ;;  %v1213_v21 = vadd.f32 1.0, %v1922_v18 }
 0x183   : > { %v1926_v22 = vpop.eup %1925  ;;  %1951 = vrcp.f32 %v1212_v19  ;;  %v1214_v23 = vadd.f32 1.0, %v1924_v20 }
 0x184   : > { %v1928_v24 = vpop.eup %1927  ;;  %1953 = vrcp.f32 %v1213_v21  ;;  %v1215_v25 = vadd.f32 1.0, %v1926_v22 }
 0x185   : > { %v1930_v26 = vpop.eup %1929  ;;  %1955 = vrcp.f32 %v1214_v23  ;;  %v1216_v28 = vadd.f32 1.0, %v1928_v24 }
 0x186   : > { %v1932_v29 = vpop.eup %1931  ;;  %v1249_v31 = vmul.f32 %v1930_v26, %v2230_v62  ;;  %1957 = vrcp.f32 %v1215_v25 }
 0x187   : > { %v1934_v32 = vpop.eup %1933  ;;  %v1250_v33 = vmul.f32 %v1932_v29, %v2233_v63  ;;  %1959 = vrcp.f32 %v1216_v28 }
 0x188   : > { %v1936_v34 = vpop.eup %1935  ;;  %v1251_v37 = vmul.f32 %v1934_v32, %v2238_v3 }
 0x189   : > { %v1938_v38 = vpop.eup %1937  ;;  %v1604_v41 = vpack.c.bf16 %v1250_v33, %v1249_v31  ;;  %v1252_v42 = vmul.f32 %v1936_v34, %v2241_v4 }
 0x18a   : > { %v1940_v43 = vpop.eup %1939  ;;  %v1253_v44 = vmul.f32 %v1938_v38, %v2248_v10 }
 0x18b   : > { %v1942_v45 = vpop.eup %1941  ;;  %1605 = vst [vmem:[%s2364_s4] sm:$0xff] %v1604_v41   ;;  %v1609_v62 = vpack.c.bf16 %v1252_v42, %v1251_v37  ;;  %v1254_v47 = vmul.f32 %v1940_v43, %v2251_v11 }
 0x18c   : > { %v1944_v63 = vpop.eup %1943  ;;  %v1255_v49 = vmul.f32 %v1942_v45, %v2256_v15 }
 0x18d   : > { %v1946_v50 = vpop.eup %1945  ;;  %1641 = vst [vmem:[%s2364_s4 + $0x8] sm:$0xff] %v1609_v62   ;;  %v1614_v3 = vpack.c.bf16 %v1254_v47, %v1253_v44  ;;  %v1256_v4 = vmul.f32 %v1944_v63, %v2259_v16 }
 0x18e   : > { %v1948_v10 = vpop.eup %1947  ;;  %v1257_v51 = vmul.f32 %v1946_v50, %v2268_v27 }
 0x18f   : > { %v1950_v52 = vpop.eup %1949  ;;  %1642 = vst [vmem:[%s2364_s4 + $0x10] sm:$0xff] %v1614_v3   ;;  %v1619_v11 = vpack.c.bf16 %v1256_v4, %v1255_v49  ;;  %v1258_v53 = vmul.f32 %v1948_v10, %v2273_v30 }
 0x190   : > { %v1952_v15 = vpop.eup %1951  ;;  %v1259_v55 = vmul.f32 %v1950_v52, %v2279_v35 }
 0x191   : > { %v1954_v56 = vpop.eup %1953  ;;  %1643 = vst [vmem:[%s2364_s4 + $0x18] sm:$0xff] %v1619_v11   ;;  %v1624_v16 = vpack.c.bf16 %v1258_v53, %v1257_v51  ;;  %v1260_v57 = vmul.f32 %v1952_v15, %v2282_v36 }
 0x192   : > { %v1956_v27 = vpop.eup %1955  ;;  %v1261_v58 = vmul.f32 %v1954_v56, %v2286_v39 }
 0x193   : > { %v1958_v54 = vpop.eup %1957  ;;  %1644 = vst [vmem:[%s2364_s4 + $0x20] sm:$0xff] %v1624_v16   ;;  %v1629_v30 = vpack.c.bf16 %v1260_v57, %v1259_v55  ;;  %v1262_v59 = vmul.f32 %v1956_v27, %v2289_v40 }
 0x194   : > { %v1960_v35 = vpop.eup %1959  ;;  %v1263_v60 = vmul.f32 %v1958_v54, %v2297_v46 }
 0x195   : > { %1645 = vst [vmem:[%s2364_s4 + $0x28] sm:$0xff] %v1629_v30   ;;  %v1634_v61 = vpack.c.bf16 %v1262_v59, %v1261_v58  ;;  %v1264_v36 = vmul.f32 %v1960_v35, %v2301_v48 }
 0x197   : > { %1646 = vst [vmem:[%s2364_s4 + $0x30] sm:$0xff] %v1634_v61   ;;  %v1639_v39 = vpack.c.bf16 %v1264_v36, %v1263_v60 }
 0x199   : > { %1647 = vst [vmem:[%s2364_s4 + $0x38] sm:$0xff] %v1639_v39  }
 0x19a PF: > { %s14_s19 = sadd.s32 1, %s1999_s19   ;;  %s2365_s15 = smov %s1987_s16 }
 0x19b   : > { %p11_p12 = scmp.ge.s32.totalorder %s14_s19, 5   ;;  %s2366_s16 = smov %s2062_s23 }
 0x19c   : > { %s2367_s17 = smov %s1995_s18  ;;  %s2368_s18 = smov %s2370_s20 }
 0x19d   :  { %13 = sbr.rel (!%p11_p12) target bundleno = 3 (0x3), region = 111 }

// kernel: fused_mbconv_stack_forward.7
= control target key start
LH: loop header
LB: loop body
LE: loop exit
PB: predicated region body
PF: predicated region fallthrough
CT: control target
= control target key end

     0   :  { %s740_s1 = inlined_call_operand.vmem [shape: bf16[128,128], index: 1, kind: input, shape index: {}]   ;;  %s741_s0 = inlined_call_operand.vmem [shape: bf16[128,128], index: 0, kind: input, shape index: {}]   ;;  %s742_s2 = inlined_call_operand.vmem [shape: f32[1,128], index: 2, kind: input, shape index: {}]   ;;  %s743_s3 = inlined_call_operand.vmem [shape: f32[1,128], index: 3, kind: input, shape index: {}]   ;;  %s744_s4 = inlined_call_operand.vmem [shape: bf16[128,128], index: 4, kind: output, shape index: {}]  }
   0x1   :  { %v621_v0 = vld [vmem:[%s740_s1 + $0x38] sm:$0xff]   ;;  %v622_v1 = vld [vmem:[%s740_s1 + $0x30] sm:$0xff]   ;;  %v623_v2 = vld [vmem:[%s740_s1 + $0x28] sm:$0xff]  }
   0x2   :  { %573 = vmatprep.subr.bf16.mxu0 %v621_v0  ;;  %605 = vmatprep.subr.bf16.mxu1 %v621_v0  ;;  %v624_v3 = vld [vmem:[%s740_s1 + $0x20] sm:$0xff]   ;;  %v625_v6 = vld [vmem:[%s740_s1 + $0x18] sm:$0xff]   ;;  %v626_v7 = vld [vmem:[%s740_s1 + $0x10] sm:$0xff]  }
   0x3   :  { %574 = vmatpush3.bf16.msra.mxu0 %v621_v0  ;;  %613 = vmatpush3.bf16.msra.mxu1 %v621_v0  ;;  %v629_v4 = vld [vmem:[%s741_s0] sm:$0xff]   ;;  %v627_v8 = vld [vmem:[%s740_s1 + $0x8] sm:$0xff]   ;;  %v633_v12 = vld [vmem:[%s741_s0 + $0x10] sm:$0xff]  }
   0x4   :  { %575 = vmatprep.subr.bf16.mxu0 %v622_v1  ;;  %606 = vmatprep.subr.bf16.mxu1 %v622_v1  ;;  %v630_v5 = vld [vmem:[%s741_s0 + $0x20] sm:$0xff]   ;;  %v631_v10 = vld [vmem:[%s741_s0 + $0x8] sm:$0xff]   ;;  %v634_v13 = vld [vmem:[%s741_s0 + $0x30] sm:$0xff]  }
   0x5   :  { %589 = vmatprep.mubr.bf16.mxu0 %v629_v4  ;;  %597 = vmatprep.mubr.bf16.mxu1 %v630_v5  ;;  %v628_v9 = vld [vmem:[%s740_s1] sm:$0xff]   ;;  %v632_v11 = vld [vmem:[%s741_s0 + $0x28] sm:$0xff]   ;;  %v635_v14 = vld [vmem:[%s741_s0 + $0x18] sm:$0xff]  }
   0x6   :  { %v636_v15 = vld [vmem:[%s741_s0 + $0x38] sm:$0xff]   ;;  %v476_v16 = vld [vmem:[%s742_s2] ss:$0 sm:$0xff] }
   0x7   :  { %576 = vmatpush3.bf16.msra.mxu0 %v622_v1  ;;  %614 = vmatpush3.bf16.msra.mxu1 %v622_v1  ;;  %v477_v23 = vld [vmem:[%s743_s3] ss:$0 sm:$0xff] }
   0x8   :  { %577 = vmatprep.subr.bf16.mxu0 %v623_v2  ;;  %607 = vmatprep.subr.bf16.mxu1 %v623_v2 }
   0xb   :  { %578 = vmatpush3.bf16.msra.mxu0 %v623_v2  ;;  %615 = vmatpush3.bf16.msra.mxu1 %v623_v2 }
   0xc   :  { %579 = vmatprep.subr.bf16.mxu0 %v624_v3  ;;  %608 = vmatprep.subr.bf16.mxu1 %v624_v3 }
   0xf   :  { %580 = vmatpush3.bf16.msra.mxu0 %v624_v3  ;;  %616 = vmatpush3.bf16.msra.mxu1 %v624_v3 }
  0x10   :  { %581 = vmatprep.subr.bf16.mxu0 %v625_v6  ;;  %609 = vmatprep.subr.bf16.mxu1 %v625_v6 }
  0x13   :  { %582 = vmatpush3.bf16.msra.mxu0 %v625_v6  ;;  %617 = vmatpush3.bf16.msra.mxu1 %v625_v6 }
  0x14   :  { %583 = vmatprep.subr.bf16.mxu0 %v626_v7  ;;  %610 = vmatprep.subr.bf16.mxu1 %v626_v7 }
  0x17   :  { %584 = vmatpush3.bf16.msra.mxu0 %v626_v7  ;;  %618 = vmatpush3.bf16.msra.mxu1 %v626_v7 }
  0x18   :  { %585 = vmatprep.subr.bf16.mxu0 %v627_v8  ;;  %611 = vmatprep.subr.bf16.mxu1 %v627_v8 }
  0x1b   :  { %586 = vmatpush3.bf16.msra.mxu0 %v627_v8  ;;  %619 = vmatpush3.bf16.msra.mxu1 %v627_v8 }
  0x1c   :  { %587 = vmatprep.subr.bf16.mxu0 %v628_v9  ;;  %612 = vmatprep.subr.bf16.mxu1 %v628_v9 }
  0x1f   :  { %588 = vmatpush3.bf16.msra.mxu0 %v628_v9  ;;  %620 = vmatpush3.bf16.msra.mxu1 %v628_v9 }
  0x22   :  { %590 = vmatmul.mubr.bf16.vlgmr.msra.gmra.mxu0 %v631_v10  ;;  %598 = vmatmul.mubr.bf16.vlgmr.msra.gmra.mxu1 %v632_v11 }
  0x23   :  { %593 = vmatprep.mubr.bf16.mxu0 %v633_v12  ;;  %601 = vmatprep.mubr.bf16.mxu1 %v634_v13 }
  0x2a   :  { %594 = vmatmul.mubr.bf16.gmra.mxu0 %v635_v14  ;;  %602 = vmatmul.mubr.bf16.gmra.mxu1 %v636_v15 }
  0xe2   :  { %v591_v17 = vpop.f32.mrf.mxu0  ;;  %v599_v18 = vpop.f32.mrf.mxu1 }
  0xe3   :  { %v339_v19 = vmul.f32 %v591_v17, %v476_v16  ;;  %v347_v20 = vmul.f32 %v599_v18, %v476_v16 }
  0xe4   :  { %v216_v21 = vpop.f32.mrf.mxu0  ;;  %v248_v22 = vpop.f32.mrf.mxu1 }
  0xe5   :  { %v337_v24 = vmul.f32 %v476_v16, %v216_v21  ;;  %v345_v25 = vmul.f32 %v476_v16, %v248_v22  ;;  %v362_v30 = vadd.f32 %v477_v23, %v339_v19  ;;  %v370_v31 = vadd.f32 %v477_v23, %v347_v20 }
  0xe6   :  { %v592_v26 = vpop.f32.mrf.mxu0  ;;  %v600_v27 = vpop.f32.mrf.mxu1 }
  0xe7   :  { %v340_v28 = vmul.f32 %v592_v26, %v476_v16  ;;  %v348_v29 = vmul.f32 %v600_v27, %v476_v16  ;;  %v360_v38 = vadd.f32 %v477_v23, %v337_v24  ;;  %v368_v39 = vadd.f32 %v477_v23, %v345_v25 }
  0xe8   :  { %v219_v32 = vpop.f32.mrf.mxu0  ;;  %v251_v33 = vpop.f32.mrf.mxu1 }
  0xe9   :  { %v363_v34 = vadd.f32 %v477_v23, %v340_v28  ;;  %v371_v35 = vadd.f32 %v477_v23, %v348_v29  ;;  %v338_v36 = vmul.f32 %v476_v16, %v219_v32  ;;  %v346_v37 = vmul.f32 %v476_v16, %v251_v33 }
  0xea   :  { %v595_v40 = vpop.f32.mrf.mxu0  ;;  %v603_v41 = vpop.f32.mrf.mxu1 }
  0xeb   :  { %v518_v42 = vpack.c.bf16 %v363_v34, %v362_v30  ;;  %v538_v43 = vpack.c.bf16 %v371_v35, %v370_v31  ;;  %v361_v44 = vadd.f32 %v477_v23, %v338_v36  ;;  %v369_v45 = vadd.f32 %v477_v23, %v346_v37 }
  0xec   :  { %v343_v46 = vmul.f32 %v595_v40, %v476_v16  ;;  %v351_v47 = vmul.f32 %v603_v41, %v476_v16  ;;  %v232_v48 = vpop.f32.mrf.mxu0  ;;  %v264_v49 = vpop.f32.mrf.mxu1 }
  0xed   :  { %550 = vst [vmem:[%s744_s4 + $0x8] sm:$0xff] %v518_v42   ;;  %554 = vst [vmem:[%s744_s4 + $0x28] sm:$0xff] %v538_v43   ;;  %v513_v50 = vpack.c.bf16 %v361_v44, %v360_v38  ;;  %v533_v51 = vpack.c.bf16 %v369_v45, %v368_v39  ;;  %v341_v52 = vmul.f32 %v476_v16, %v232_v48 }
  0xee   :  { %v349_v53 = vmul.f32 %v476_v16, %v264_v49  ;;  %v596_v54 = vpop.f32.mrf.mxu0  ;;  %v604_v55 = vpop.f32.mrf.mxu1  ;;  %v366_v58 = vadd.f32 %v477_v23, %v343_v46  ;;  %v374_v59 = vadd.f32 %v477_v23, %v351_v47 }
  0xef   :  { %514 = vst [vmem:[%s744_s4] sm:$0xff] %v513_v50   ;;  %553 = vst [vmem:[%s744_s4 + $0x20] sm:$0xff] %v533_v51   ;;  %v344_v56 = vmul.f32 %v596_v54, %v476_v16  ;;  %v352_v57 = vmul.f32 %v604_v55, %v476_v16  ;;  %v364_v2 = vadd.f32 %v477_v23, %v341_v52 }
  0xf0   :  { %v235_v60 = vpop.f32.mrf.mxu0  ;;  %v267_v61 = vpop.f32.mrf.mxu1  ;;  %v372_v3 = vadd.f32 %v477_v23, %v349_v53 }
  0xf1   :  { %v367_v62 = vadd.f32 %v477_v23, %v344_v56  ;;  %v375_v63 = vadd.f32 %v477_v23, %v352_v57  ;;  %v342_v0 = vmul.f32 %v476_v16, %v235_v60  ;;  %v350_v1 = vmul.f32 %v476_v16, %v267_v61 }
  0xf3   :  { %v528_v4 = vpack.c.bf16 %v367_v62, %v366_v58  ;;  %v548_v5 = vpack.c.bf16 %v375_v63, %v374_v59  ;;  %v365_v6 = vadd.f32 %v477_v23, %v342_v0  ;;  %v373_v7 = vadd.f32 %v477_v23, %v350_v1 }
  0xf5   :  { %552 = vst [vmem:[%s744_s4 + $0x18] sm:$0xff] %v528_v4   ;;  %556 = vst [vmem:[%s744_s4 + $0x38] sm:$0xff] %v548_v5   ;;  %v523_v8 = vpack.c.bf16 %v365_v6, %v364_v2  ;;  %v543_v9 = vpack.c.bf16 %v373_v7, %v372_v3 }
  0xf7   :  { %551 = vst [vmem:[%s744_s4 + $0x10] sm:$0xff] %v523_v8   ;;  %555 = vst [vmem:[%s744_s4 + $0x30] sm:$0xff] %v543_v9  }

// kernel: fused_mbconv_stack_forward.5
= control target key start
LH: loop header
LB: loop body
LE: loop exit
PB: predicated region body
PF: predicated region fallthrough
CT: control target
= control target key end

     0   :  { %s2213_s18 = smov 0   ;;  %s2215_s19 = smov 0   ;;  %s2618_s0 = inlined_call_operand.vmem [shape: bf16[512,72], index: 0, kind: input, shape index: {}]   ;;  %s2619_s1 = inlined_call_operand.vmem [shape: bf16[72,128], index: 1, kind: input, shape index: {}]   ;;  %s2620_s2 = inlined_call_operand.vmem [shape: f32[1,128], index: 2, kind: input, shape index: {}]   ;;  %s2621_s3 = inlined_call_operand.vmem [shape: f32[1,128], index: 3, kind: input, shape index: {}]   ;;  %s2622_s4 = inlined_call_operand.vmem [shape: bf16[512,128], index: 4, kind: input, shape index: {}]   ;;  %s2623_s5 = inlined_call_operand.vmem [shape: bf16[512,128], index: 5, kind: output, shape index: {}]  }
   0x1   :  { %s2217_s20 = smov 0  }
   0x2 LB: > { %s34_s21 = sadd.s32 1, %s2177_s19  ;;  %p1593_p0 = scmp.ge.s32.totalorder %s2181_s20, 1  ;;  %s2181_s20 = sphi %s2217_s20, %s15_s20   ;;  %s2177_s19 = sphi %s2215_s19, %s2639_s19   ;;  %s2173_s18 = sphi %s2213_s18, %s2638_s18  }
   0x3   : > { %p36_p1 = scmp.ge.s32.totalorder %s34_s21, 2  ;;  %p262_p2 = scmp.lt.s32.totalorder %s2181_s20, 3 }
   0x5   : > { %s2641_s21 = smov (%p36_p1, %s34_s21), 0  ;;  %p263_p3 = pnand %p1593_p0, %p262_p2 }
   0x6   : > { %s1594_s26 = sshll.u32 (!%p263_p3), %s2173_s18, 5 }
   0x7   : > { %266 = sbr.rel (%p263_p3) target bundleno = 323 (0x143), region = 40  ;;  %p319_p4 = scmp.lt.s32.totalorder (!%p263_p3), %s1594_s26, 63 }
   0xc   : > { %v2010_v0 = vld [vmem:[%s2619_s1 + $0x20] ss:$0 sps:$4 sm:$0xff]   ;;  %vm626_vm0 = vcmask 1043456   ;;  %v2011_v1 = vld [vmem:[%s2619_s1 + $0x18] sm:$0xff]   ;;  %v2012_v3 = vld [vmem:[%s2619_s1 + $0x10] sm:$0xff]   ;;  %s2643_s26 = smov (!%p319_p4, %s1594_s26), 63 }
   0xd   : > { %1984 = vmatprep.subr.msk.bf16.mxu0 %vm626_vm0, %v2010_v0  ;;  %1985 = vmatprep.subr.msk.bf16.mxu1 %vm626_vm0, %v2010_v0  ;;  %v628_v2 = vsel %vm626_vm0, %v2010_v0, 0  ;;  %v2013_v4 = vld [vmem:[%s2619_s1 + $0x8] sm:$0xff]   ;;  %s2243_s6 = sshll.u32 %s2643_s26, 2  ;;  %vm577_vm1 = vcmask 588800   ;;  %v2014_v7 = vld [vmem:[%s2619_s1] sm:$0xff]  }
   0xe   : > { %1933 = vmatpush3.bf16.msra.mxu0 %v628_v2  ;;  %1979 = vmatpush3.bf16.msra.mxu1 %v628_v2  ;;  %s2249_s9 = scalar_lea.vmem %s2618_s0, %s2243_s6  ;;  %s2290_s14 = scalar_lea.vmem %s2622_s4, %s2243_s6  ;;  %v2295_v22 = vld [vmem:[%s2620_s2] ss:$0 sm:$0xff] }
   0xf   : > { %1934 = vmatprep.subr.bf16.mxu0 %v2011_v1  ;;  %1975 = vmatprep.subr.bf16.mxu1 %v2011_v1  ;;  %v2015_v5 = vld [vmem:[%s2249_s9] sm:$0xff]   ;;  %v2017_v8 = vld [vmem:[%s2249_s9 + $0x8] sm:$0xff]   ;;  %v2019_v10 = vld [vmem:[%s2249_s9 + $0x10] sm:$0xff]   ;;  %s2530_s24 = scalar_lea.vmem %s2623_s5, %s2243_s6 }
  0x10   : > { %v2016_v6 = vld [vmem:[%s2249_s9 + $0x40] sm:$0xff]   ;;  %1942 = vmatprep.mubr.msk.bf16.mxu0 %vm577_vm1, %v2015_v5  ;;  %v2018_v9 = vld [vmem:[%s2249_s9 + $0x48] sm:$0xff]   ;;  %v2020_v11 = vld [vmem:[%s2249_s9 + $0x50] sm:$0xff]  }
  0x11   : > { %1958 = vmatprep.mubr.msk.bf16.mxu1 %vm577_vm1, %v2016_v6  ;;  %v2021_v12 = vld [vmem:[%s2249_s9 + $0x18] sm:$0xff]   ;;  %v2023_v14 = vld [vmem:[%s2249_s9 + $0x20] sm:$0xff]   ;;  %v2025_v16 = vld [vmem:[%s2249_s9 + $0x28] sm:$0xff]  }
  0x12   : > { %1935 = vmatpush3.bf16.msra.mxu0 %v2011_v1  ;;  %1980 = vmatpush3.bf16.msra.mxu1 %v2011_v1  ;;  %v2022_v13 = vld [vmem:[%s2249_s9 + $0x58] sm:$0xff]   ;;  %v2024_v15 = vld [vmem:[%s2249_s9 + $0x60] sm:$0xff]   ;;  %v2026_v17 = vld [vmem:[%s2249_s9 + $0x68] sm:$0xff]  }
  0x13   : > { %1936 = vmatprep.subr.bf16.mxu0 %v2012_v3  ;;  %1976 = vmatprep.subr.bf16.mxu1 %v2012_v3  ;;  %v2027_v18 = vld [vmem:[%s2249_s9 + $0x30] sm:$0xff]   ;;  %v2029_v20 = vld [vmem:[%s2249_s9 + $0x38] sm:$0xff]   ;;  %v2300_v24 = vld [vmem:[%s2621_s3] ss:$0 sm:$0xff] }
  0x14   : > { %v2028_v19 = vld [vmem:[%s2249_s9 + $0x70] sm:$0xff]   ;;  %v2030_v21 = vld [vmem:[%s2249_s9 + $0x78] sm:$0xff]   ;;  %v2303_v25 = vld [vmem:[%s2290_s14 + $0x8] sm:$0xff]  }
  0x15   : > { %v2308_v29 = vld [vmem:[%s2290_s14 + $0x48] sm:$0xff]   ;;  %v2311_v30 = vld [vmem:[%s2290_s14] sm:$0xff]   ;;  %v1743_v38 = vunpack.c.l.bf16 %v2303_v25 }
  0x16   : > { %1937 = vmatpush3.bf16.msra.mxu0 %v2012_v3  ;;  %1981 = vmatpush3.bf16.msra.mxu1 %v2012_v3  ;;  %v2314_v31 = vld [vmem:[%s2290_s14 + $0x40] sm:$0xff]  }
  0x17   : > { %1938 = vmatprep.subr.bf16.mxu0 %v2013_v4  ;;  %1977 = vmatprep.subr.bf16.mxu1 %v2013_v4 }
  0x1a   : > { %1939 = vmatpush3.bf16.msra.mxu0 %v2013_v4  ;;  %1982 = vmatpush3.bf16.msra.mxu1 %v2013_v4 }
  0x1b   : > { %1940 = vmatprep.subr.bf16.mxu0 %v2014_v7  ;;  %1978 = vmatprep.subr.bf16.mxu1 %v2014_v7 }
  0x1e   : > { %1941 = vmatpush3.bf16.msra.mxu0 %v2014_v7  ;;  %1983 = vmatpush3.bf16.msra.mxu1 %v2014_v7 }
  0x21   : > { %1943 = vmatmul.mubr.msk.bf16.vlgmr.msra.gmra.mxu0 %vm577_vm1, %v2017_v8  ;;  %1959 = vmatmul.mubr.msk.bf16.vlgmr.msra.gmra.mxu1 %vm577_vm1, %v2018_v9 }
  0x22   : > { %1946 = vmatprep.mubr.msk.bf16.mxu0 %vm577_vm1, %v2019_v10  ;;  %1962 = vmatprep.mubr.msk.bf16.mxu1 %vm577_vm1, %v2020_v11 }
  0x29   : > { %1947 = vmatmul.mubr.msk.bf16.gmra.mxu0 %vm577_vm1, %v2021_v12  ;;  %1963 = vmatmul.mubr.msk.bf16.gmra.mxu1 %vm577_vm1, %v2022_v13 }
  0x2a   : > { %1950 = vmatprep.mubr.msk.bf16.mxu0 %vm577_vm1, %v2023_v14  ;;  %1966 = vmatprep.mubr.msk.bf16.mxu1 %vm577_vm1, %v2024_v15 }
  0x31   : > { %1951 = vmatmul.mubr.msk.bf16.gmra.mxu0 %vm577_vm1, %v2025_v16  ;;  %1967 = vmatmul.mubr.msk.bf16.gmra.mxu1 %vm577_vm1, %v2026_v17 }
  0x32   : > { %1954 = vmatprep.mubr.msk.bf16.mxu0 %vm577_vm1, %v2027_v18  ;;  %1970 = vmatprep.mubr.msk.bf16.mxu1 %vm577_vm1, %v2028_v19 }
  0x39   : > { %1955 = vmatmul.mubr.msk.bf16.gmra.mxu0 %vm577_vm1, %v2029_v20  ;;  %1971 = vmatmul.mubr.msk.bf16.gmra.mxu1 %vm577_vm1, %v2030_v21 }
  0xe1   : > { %v1944_v23 = vpop.f32.mrf.mxu0  ;;  %v1960_v26 = vpop.f32.mrf.mxu1 }
  0xe2   : > { %v899_v27 = vmul.f32 %v1944_v23, %v2295_v22  ;;  %v915_v28 = vmul.f32 %v1960_v26, %v2295_v22 }
  0xe3   : > { %v664_v32 = vpop.f32.mrf.mxu0  ;;  %v728_v33 = vpop.f32.mrf.mxu1 }
  0xe4   : > { %v2317_v34 = vadd.f32 %v2300_v24, %v899_v27  ;;  %v2320_v35 = vadd.f32 %v2300_v24, %v915_v28  ;;  %v897_v36 = vmul.f32 %v2295_v22, %v664_v32  ;;  %v913_v37 = vmul.f32 %v2295_v22, %v728_v33  ;;  %v2385_v32 = vld [vmem:[%s2290_s14 + $0x18] sm:$0xff]  }
  0xe5   : > { %v1945_v42 = vpop.f32.mrf.mxu0  ;;  %v1961_v43 = vpop.f32.mrf.mxu1 }
  0xe6   : > { %v1641_v44 = vmul.f32 -1.442695, %v2317_v34  ;;  %v1657_v45 = vmul.f32 -1.442695, %v2320_v35  ;;  %v2331_v46 = vadd.f32 %v2300_v24, %v897_v36  ;;  %v2334_v47 = vadd.f32 %v2300_v24, %v913_v37 }
  0xe7   : > { %v900_v48 = vmul.f32 %v1945_v42, %v2295_v22  ;;  %v916_v50 = vmul.f32 %v1961_v43, %v2295_v22  ;;  %v667_v52 = vpop.f32.mrf.mxu0  ;;  %v731_v53 = vpop.f32.mrf.mxu1 }
  0xe8   : > { %2031 = vpow2.f32 %v1641_v44  ;;  %v1639_v54 = vmul.f32 -1.442695, %v2331_v46  ;;  %v1655_v55 = vmul.f32 -1.442695, %v2334_v47  ;;  %v898_v56 = vmul.f32 %v2295_v22, %v667_v52  ;;  %v2403_v52 = vld [vmem:[%s2290_s14 + $0x10] sm:$0xff]  }
  0xe9   : > { %2033 = vpow2.f32 %v1657_v45  ;;  %v2344_v57 = vadd.f32 %v2300_v24, %v900_v48  ;;  %v2347_v58 = vadd.f32 %v2300_v24, %v916_v50  ;;  %v914_v59 = vmul.f32 %v2295_v22, %v731_v53  ;;  %v1948_v60 = vpop.f32.mrf.mxu0  ;;  %v1964_v61 = vpop.f32.mrf.mxu1  ;;  %v2396_v45 = vld [vmem:[%s2290_s14 + $0x58] sm:$0xff]   ;;  %v2406_v53 = vld [vmem:[%s2290_s14 + $0x50] sm:$0xff]  }
  0xea   : > { %2035 = vpow2.f32 %v1639_v54  ;;  %v2351_v62 = vadd.f32 %v2300_v24, %v898_v56  ;;  %v903_v63 = vmul.f32 %v1948_v60, %v2295_v22  ;;  %v919_v0 = vmul.f32 %v1964_v61, %v2295_v22 }
  0xeb   : > { %2037 = vpow2.f32 %v1655_v55  ;;  %v1642_v1 = vmul.f32 -1.442695, %v2344_v57  ;;  %v1658_v2 = vmul.f32 -1.442695, %v2347_v58  ;;  %v2358_v3 = vadd.f32 %v2300_v24, %v914_v59  ;;  %v680_v4 = vpop.f32.mrf.mxu0  ;;  %v744_v5 = vpop.f32.mrf.mxu1 }
  0xec   : > { %v1640_v6 = vmul.f32 -1.442695, %v2351_v62  ;;  %v2362_v7 = vadd.f32 %v2300_v24, %v903_v63  ;;  %v2365_v8 = vadd.f32 %v2300_v24, %v919_v0  ;;  %v901_v9 = vmul.f32 %v2295_v22, %v680_v4 }
  0xed   : > { %2039 = vpow2.f32 %v1642_v1  ;;  %v1656_v11 = vmul.f32 -1.442695, %v2358_v3  ;;  %v917_v12 = vmul.f32 %v2295_v22, %v744_v5  ;;  %v1949_v13 = vpop.f32.mrf.mxu0  ;;  %v1965_v14 = vpop.f32.mrf.mxu1 }
  0xee   : > { %2041 = vpow2.f32 %v1658_v2  ;;  %v1645_v15 = vmul.f32 -1.442695, %v2362_v7  ;;  %v1661_v16 = vmul.f32 -1.442695, %v2365_v8  ;;  %v2374_v17 = vadd.f32 %v2300_v24, %v901_v9 }
  0xef   : > { %2043 = vpow2.f32 %v1640_v6  ;;  %v2377_v18 = vadd.f32 %v2300_v24, %v917_v12  ;;  %v904_v19 = vmul.f32 %v1949_v13, %v2295_v22  ;;  %v920_v20 = vmul.f32 %v1965_v14, %v2295_v22  ;;  %v683_v21 = vpop.f32.mrf.mxu0  ;;  %v747_v23 = vpop.f32.mrf.mxu1 }
  0xf0   : > { %2045 = vpow2.f32 %v1656_v11  ;;  %v1643_v26 = vmul.f32 -1.442695, %v2374_v17  ;;  %v902_v27 = vmul.f32 %v2295_v22, %v683_v21  ;;  %v918_v28 = vmul.f32 %v2295_v22, %v747_v23 }
  0xf1   : > { %2047 = vpow2.f32 %v1645_v15  ;;  %v1659_v33 = vmul.f32 -1.442695, %v2377_v18  ;;  %v2389_v36 = vadd.f32 %v2300_v24, %v904_v19  ;;  %v2392_v37 = vadd.f32 %v2300_v24, %v920_v20  ;;  %v1952_v42 = vpop.f32.mrf.mxu0  ;;  %v1968_v43 = vpop.f32.mrf.mxu1 }
  0xf2   : > { %2049 = vpow2.f32 %v1661_v16  ;;  %v2399_v48 = vadd.f32 %v2300_v24, %v902_v27  ;;  %v907_v50 = vmul.f32 %v1952_v42, %v2295_v22  ;;  %v923_v56 = vmul.f32 %v1968_v43, %v2295_v22 }
  0xf3   : > { %2051 = vpow2.f32 %v1643_v26  ;;  %v1646_v54 = vmul.f32 -1.442695, %v2389_v36  ;;  %v1662_v55 = vmul.f32 -1.442695, %v2392_v37  ;;  %v696_v59 = vpop.f32.mrf.mxu0  ;;  %v760_v60 = vpop.f32.mrf.mxu1  ;;  %v2414_v0 = vadd.f32 %v2300_v24, %v918_v28 }
  0xf4   : > { %2053 = vpow2.f32 %v1659_v33  ;;  %v1644_v63 = vmul.f32 -1.442695, %v2399_v48  ;;  %v905_v4 = vmul.f32 %v2295_v22, %v696_v59  ;;  %v921_v5 = vmul.f32 %v2295_v22, %v760_v60 }
  0xf5   : > { %v2032_v1 = vpop.eup %2031  ;;  %2055 = vpow2.f32 %v1646_v54  ;;  %v1953_v6 = vpop.f32.mrf.mxu0  ;;  %v2422_v19 = vadd.f32 %v2300_v24, %v907_v50  ;;  %v2425_v20 = vadd.f32 %v2300_v24, %v923_v56  ;;  %v1660_v28 = vmul.f32 -1.442695, %v2414_v0 }
  0xf6   : > { %v1969_v9 = vpop.f32.mrf.mxu1  ;;  %v2034_v11 = vpop.eup %2033  ;;  %v1066_v12 = vadd.f32 1.0, %v2032_v1  ;;  %2057 = vpow2.f32 %v1662_v55  ;;  %v908_v33 = vmul.f32 %v1953_v6, %v2295_v22  ;;  %v2430_v43 = vadd.f32 %v2300_v24, %v905_v4 }
  0xf7   : > { %v2036_v15 = vpop.eup %2035  ;;  %v1082_v16 = vadd.f32 1.0, %v2034_v11  ;;  %2059 = vpow2.f32 %v1644_v63  ;;  %v699_v21 = vpop.f32.mrf.mxu0  ;;  %v2433_v50 = vadd.f32 %v2300_v24, %v921_v5  ;;  %v2439_v11 = vmul.f32 -1.442695, %v2422_v19 }
  0xf8   : > { %v763_v23 = vpop.f32.mrf.mxu1  ;;  %v2038_v26 = vpop.eup %2037  ;;  %2061 = vrcp.f32 %v1066_v12  ;;  %v1064_v27 = vadd.f32 1.0, %v2036_v15  ;;  %v2442_v4 = vmul.f32 -1.442695, %v2425_v20  ;;  %v2445_v15 = vadd.f32 %v2300_v24, %v908_v33 }
  0xf9   : > { %2063 = vrcp.f32 %v1082_v16  ;;  %v1080_v42 = vadd.f32 1.0, %v2038_v26  ;;  %v1956_v54 = vpop.f32.mrf.mxu0  ;;  %v924_v16 = vmul.f32 %v1969_v9, %v2295_v22  ;;  %v922_v33 = vmul.f32 %v2295_v22, %v763_v23 }
  0xfa   : > { %v2040_v55 = vpop.eup %2039  ;;  %2065 = vrcp.f32 %v1064_v27  ;;  %v1972_v63 = vpop.f32.mrf.mxu1  ;;  %v2463_v23 = vmul.f32 -1.442695, %v2445_v15 }
  0xfb   : > { %v2042_v1 = vpop.eup %2041  ;;  %2067 = vrcp.f32 %v1080_v42  ;;  %v1067_v6 = vadd.f32 1.0, %v2040_v55  ;;  %v2449_v42 = vmul.f32 -1.442695, %v2430_v43  ;;  %v2452_v55 = vmul.f32 -1.442695, %v2433_v50  ;;  %v712_v14 = vpop.f32.mrf.mxu0 }
  0xfc   : > { %v2044_v5 = vpop.eup %2043  ;;  %v1083_v12 = vadd.f32 1.0, %v2042_v1  ;;  %2069 = vpow2.f32 %v1660_v28  ;;  %v906_v28 = vmul.f32 %v2295_v22, %v699_v21  ;;  %v776_v1 = vpop.f32.mrf.mxu1  ;;  %v2459_v61 = vadd.f32 %v2300_v24, %v924_v16 }
  0xfd   : > { %v2046_v26 = vpop.eup %2045  ;;  %2071 = vrcp.f32 %v1067_v6  ;;  %v1065_v27 = vadd.f32 1.0, %v2044_v5  ;;  %v911_v6 = vmul.f32 %v1956_v54, %v2295_v22  ;;  %v927_v5 = vmul.f32 %v1972_v63, %v2295_v22 }
  0xfe   : > { %v2048_v60 = vpop.eup %2047  ;;  %2073 = vrcp.f32 %v1083_v12  ;;  %v1081_v59 = vadd.f32 1.0, %v2046_v26  ;;  %v909_v12 = vmul.f32 %v2295_v22, %v712_v14 }
  0xff   : > { %v2050_v13 = vpop.eup %2049  ;;  %2075 = vrcp.f32 %v1065_v27  ;;  %v1070_v9 = vadd.f32 1.0, %v2048_v60  ;;  %v925_v60 = vmul.f32 %v2295_v22, %v776_v1  ;;  %v1957_v27 = vpop.f32.mrf.mxu0 }
 0x100   : > { %v2052_v56 = vpop.eup %2051  ;;  %2077 = vrcp.f32 %v1081_v59  ;;  %v1086_v2 = vadd.f32 1.0, %v2050_v13  ;;  %v2467_v59 = vadd.f32 %v2300_v24, %v906_v28  ;;  %v2470_v13 = vadd.f32 %v2300_v24, %v922_v33  ;;  %v1973_v1 = vpop.f32.mrf.mxu1 }
 0x101   : > { %v2054_v26 = vpop.eup %2053  ;;  %2079 = vrcp.f32 %v1070_v9  ;;  %v1068_v21 = vadd.f32 1.0, %v2052_v56  ;;  %v2473_v56 = vadd.f32 %v2300_v24, %v911_v6  ;;  %v2476_v9 = vadd.f32 %v2300_v24, %v927_v5 }
 0x102   : > { %v2056_v54 = vpop.eup %2055  ;;  %2081 = vrcp.f32 %v1086_v2  ;;  %v1084_v63 = vadd.f32 1.0, %v2054_v26  ;;  %v1666_v26 = vmul.f32 -1.442695, %v2459_v61  ;;  %v2480_v28 = vadd.f32 %v2300_v24, %v909_v12  ;;  %v779_v40 = vpop.f32.mrf.mxu1 }
 0x103   : > { %v2058_v16 = vpop.eup %2057  ;;  %2083 = vrcp.f32 %v1068_v21  ;;  %v1071_v14 = vadd.f32 1.0, %v2056_v54  ;;  %v2483_v21 = vadd.f32 %v2300_v24, %v925_v60  ;;  %v912_v6 = vmul.f32 %v1957_v27, %v2295_v22  ;;  %v715_v54 = vpop.f32.mrf.mxu0 }
 0x104   : > { %v2060_v44 = vpop.eup %2059  ;;  %2085 = vrcp.f32 %v1084_v63  ;;  %v1087_v2 = vadd.f32 1.0, %v2058_v16  ;;  %v1648_v51 = vmul.f32 -1.442695, %v2467_v59  ;;  %v1664_v63 = vmul.f32 -1.442695, %v2470_v13 }
 0x105   : > { %v2062_v33 = vpop.eup %2061  ;;  %2087 = vrcp.f32 %v1071_v14  ;;  %v1069_v10 = vadd.f32 1.0, %v2060_v44  ;;  %v928_v16 = vmul.f32 %v1973_v1, %v2295_v22  ;;  %v1653_v44 = vmul.f32 -1.442695, %v2473_v56 }
 0x106   : > { %v2064_v5 = vpop.eup %2063  ;;  %2089 = vrcp.f32 %v1087_v2  ;;  %v1162_v12 = vmul.f32 %v2062_v33, %v2317_v34  ;;  %v1669_v60 = vmul.f32 -1.442695, %v2476_v9  ;;  %v1651_v2 = vmul.f32 -1.442695, %v2480_v28 }
 0x107   : > { %v2066_v41 = vpop.eup %2065  ;;  %2091 = vrcp.f32 %v1069_v10  ;;  %v1178_v27 = vmul.f32 %v2064_v5, %v2320_v35  ;;  %v910_v49 = vmul.f32 %v2295_v22, %v715_v54  ;;  %v1667_v34 = vmul.f32 -1.442695, %v2483_v21 }
 0x108   : > { %v2068_v14 = vpop.eup %2067  ;;  %2093 = vpow2.f32 %v2439_v11  ;;  %v1160_v1 = vmul.f32 %v2066_v41, %v2331_v46  ;;  %v2500_v10 = vadd.f32 %v2300_v24, %v912_v6  ;;  %v2505_v11 = vadd.f32 %v2300_v24, %v928_v16 }
 0x109   : > { %v2070_v39 = vpop.eup %2069  ;;  %2095 = vpow2.f32 %v2442_v4  ;;  %v1176_v35 = vmul.f32 %v2068_v14, %v2334_v47  ;;  %v1258_v41 = vadd.f32 %v1743_v38, %v1162_v12  ;;  %v926_v4 = vmul.f32 %v2295_v22, %v779_v40 }
 0x10a   : > { %v2072_v33 = vpop.eup %2071  ;;  %v1085_v5 = vadd.f32 1.0, %v2070_v39  ;;  %2097 = vpow2.f32 %v2449_v42  ;;  %v2624_v47 = vunpack.c.l.bf16 %v2308_v29  ;;  %v2516_v16 = vadd.f32 %v2300_v24, %v910_v49 }
 0x10b   : > { %v2074_v54 = vpop.eup %2073  ;;  %v1163_v46 = vmul.f32 %v2072_v33, %v2344_v57  ;;  %2099 = vpow2.f32 %v2452_v55  ;;  %v2625_v38 = vunpack.c.l.bf16 %v2311_v30  ;;  %v2626_v57 = vunpack.c.h.bf16 %v2303_v25 }
 0x10c   : > { %v2076_v6 = vpop.eup %2075  ;;  %v1274_v39 = vadd.f32 %v2624_v47, %v1178_v27  ;;  %v1179_v42 = vmul.f32 %v2074_v54, %v2347_v58  ;;  %2101 = vrcp.f32 %v1085_v5  ;;  %v2627_v40 = vunpack.c.l.bf16 %v2314_v31 }
 0x10d   : > { %v2078_v14 = vpop.eup %2077  ;;  %v1256_v12 = vadd.f32 %v2625_v38, %v1160_v1  ;;  %v1259_v33 = vadd.f32 %v2626_v57, %v1163_v46  ;;  %v1161_v55 = vmul.f32 %v2076_v6, %v2351_v62  ;;  %2103 = vpow2.f32 %v2463_v23 }
 0x10e   : > { %v2080_v22 = vpop.eup %2079  ;;  %v1272_v27 = vadd.f32 %v2627_v40, %v1176_v35  ;;  %v2628_v49 = vunpack.c.h.bf16 %v2308_v29  ;;  %v1177_v25 = vmul.f32 %v2078_v14, %v2358_v3  ;;  %2105 = vpow2.f32 %v1666_v26 }
 0x10f   : > { %v2082_v1 = vpop.eup %2081  ;;  %v1809_v62 = vpack.c.bf16 %v1259_v33, %v1258_v41  ;;  %v2629_v23 = vunpack.c.h.bf16 %v2311_v30  ;;  %2107 = vpow2.f32 %v1648_v51  ;;  %v2538_v35 = vadd.f32 %v2300_v24, %v926_v4 }
 0x110   : > { %v1275_v58 = vadd.f32 %v2628_v49, %v1179_v42  ;;  %v2084_v54 = vpop.eup %2083  ;;  %v2630_v6 = vunpack.c.h.bf16 %v2314_v31  ;;  %v1166_v47 = vmul.f32 %v2080_v22, %v2362_v7  ;;  %2109 = vpow2.f32 %v1664_v63 }
 0x111   : > { %v1257_v5 = vadd.f32 %v2629_v23, %v1161_v55  ;;  %v2086_v3 = vpop.eup %2085  ;;  %1896 = vst [vmem:[%s2530_s24 + $0x8] sm:$0xff] %v1809_v62   ;;  %v1182_v30 = vmul.f32 %v2082_v1, %v2365_v8  ;;  %2111 = vpow2.f32 %v1653_v44  ;;  %v1654_v51 = vmul.f32 -1.442695, %v2500_v10 }
 0x112   : > { %v1849_v46 = vpack.c.bf16 %v1275_v58, %v1274_v39  ;;  %v1273_v29 = vadd.f32 %v2630_v6, %v1177_v25  ;;  %v2088_v24 = vpop.eup %2087  ;;  %v1164_v4 = vmul.f32 %v2084_v54, %v2374_v17  ;;  %2113 = vpow2.f32 %v1669_v60 }
 0x113   : > { %v1804_v26 = vpack.c.bf16 %v1257_v5, %v1256_v12  ;;  %v1670_v31 = vmul.f32 -1.442695, %v2505_v11  ;;  %v2090_v39 = vpop.eup %2089  ;;  %v1167_v7 = vmul.f32 %v2088_v24, %v2389_v36  ;;  %v1780_v63 = vunpack.c.h.bf16 %v2406_v53 }
 0x114   : > { %1904 = vst [vmem:[%s2530_s24 + $0x48] sm:$0xff] %v1849_v46   ;;  %v1844_v41 = vpack.c.bf16 %v1273_v29, %v1272_v27  ;;  %2115 = vpow2.f32 %v1651_v2  ;;  %v1652_v8 = vmul.f32 -1.442695, %v2516_v16  ;;  %v2092_v44 = vpop.eup %2091  ;;  %v2631_v42 = vunpack.c.l.bf16 %v2385_v32 }
 0x115   : > { %1805 = vst [vmem:[%s2530_s24] sm:$0xff] %v1804_v26   ;;  %v1183_v38 = vmul.f32 %v2090_v39, %v2392_v37  ;;  %2117 = vpow2.f32 %v1667_v34  ;;  %v1668_v17 = vmul.f32 -1.442695, %v2538_v35  ;;  %v2094_v60 = vpop.eup %2093  ;;  %v2632_v12 = vunpack.c.l.bf16 %v2396_v45 }
 0x116   : > { %1903 = vst [vmem:[%s2530_s24 + $0x40] sm:$0xff] %v1844_v41   ;;  %v1262_v14 = vadd.f32 %v2631_v42, %v1166_v47  ;;  %v2633_v36 = vunpack.c.h.bf16 %v2385_v32  ;;  %v1165_v2 = vmul.f32 %v2092_v44, %v2399_v48  ;;  %2119 = vpow2.f32 %v1654_v51  ;;  %v2096_v55 = vpop.eup %2095 }
 0x117   : > { %v1278_v57 = vadd.f32 %v2632_v12, %v1182_v30  ;;  %v2634_v22 = vunpack.c.l.bf16 %v2403_v52  ;;  %v2635_v37 = vunpack.c.h.bf16 %v2396_v45  ;;  %v1074_v27 = vadd.f32 1.0, %v2094_v60  ;;  %v2098_v49 = vpop.eup %2097 }
 0x118   : > { %v1263_v33 = vadd.f32 %v2633_v36, %v1167_v7  ;;  %2121 = vpow2.f32 %v1670_v31  ;;  %v2636_v25 = vunpack.c.h.bf16 %v2403_v52  ;;  %v1090_v1 = vadd.f32 1.0, %v2096_v55  ;;  %v2100_v48 = vpop.eup %2099  ;;  %v1893_v55 = vld [vmem:[%s2290_s14 + $0x68] sm:$0xff]  }
 0x119   : > { %v1260_v40 = vadd.f32 %v2634_v22, %v1164_v4  ;;  %v1279_v34 = vadd.f32 %v2635_v37, %v1183_v38  ;;  %2123 = vpow2.f32 %v1652_v8  ;;  %v1180_v62 = vmul.f32 %v2086_v3, %v2377_v18  ;;  %v2102_v54 = vpop.eup %2101 }
 0x11a   : > { %v1819_v58 = vpack.c.bf16 %v1263_v33, %v1262_v14  ;;  %v1261_v32 = vadd.f32 %v2636_v25, %v1165_v2  ;;  %2125 = vrcp.f32 %v1074_v27  ;;  %v1072_v5 = vadd.f32 1.0, %v2098_v49  ;;  %v2104_v6 = vpop.eup %2103  ;;  %v1885_v2 = vld [vmem:[%s2290_s14 + $0x28] sm:$0xff]  }
 0x11b   : > { %v1859_v23 = vpack.c.bf16 %v1279_v34, %v1278_v57  ;;  %2127 = vrcp.f32 %v1090_v1  ;;  %v1088_v46 = vadd.f32 1.0, %v2100_v48  ;;  %v1181_v29 = vmul.f32 %v2102_v54, %v2414_v0  ;;  %v2106_v52 = vpop.eup %2105  ;;  %v1892_v34 = vld [vmem:[%s2290_s14 + $0x60] sm:$0xff]  }
 0x11c   : > { %1898 = vst [vmem:[%s2530_s24 + $0x18] sm:$0xff] %v1819_v58   ;;  %v1814_v45 = vpack.c.bf16 %v1261_v32, %v1260_v40  ;;  %2129 = vrcp.f32 %v1072_v5  ;;  %v1075_v47 = vadd.f32 1.0, %v2104_v6  ;;  %v2108_v26 = vpop.eup %2107  ;;  %v2637_v18 = vunpack.c.l.bf16 %v2406_v53  ;;  %v1884_v40 = vld [vmem:[%s2290_s14 + $0x20] sm:$0xff]  }
 0x11d   : > { %1906 = vst [vmem:[%s2530_s24 + $0x58] sm:$0xff] %v1859_v23   ;;  %2131 = vrcp.f32 %v1088_v46  ;;  %v1277_v30 = vadd.f32 %v1780_v63, %v1181_v29  ;;  %v1091_v51 = vadd.f32 1.0, %v2106_v52  ;;  %v2110_v24 = vpop.eup %2109  ;;  %v1073_v41 = vadd.f32 1.0, %v2108_v26 }
 0x11e   : > { %1897 = vst [vmem:[%s2530_s24 + $0x10] sm:$0xff] %v1814_v45   ;;  %v1276_v3 = vadd.f32 %v2637_v18, %v1180_v62  ;;  %2133 = vpow2.f32 %v1668_v17  ;;  %v2112_v4 = vpop.eup %2111  ;;  %v1089_v0 = vadd.f32 1.0, %v2110_v24  ;;  %v1759_v58 = vunpack.c.l.bf16 %v1885_v2 }
 0x11f   : > { %2135 = vrcp.f32 %v1075_v47  ;;  %v2114_v39 = vpop.eup %2113  ;;  %v1078_v7 = vadd.f32 1.0, %v2112_v4  ;;  %v1791_v25 = vunpack.c.l.bf16 %v1893_v55  ;;  %v1760_v32 = vunpack.c.h.bf16 %v1885_v2 }
 0x120   : > { %v1854_v31 = vpack.c.bf16 %v1277_v30, %v1276_v3  ;;  %2137 = vrcp.f32 %v1091_v51  ;;  %v1094_v44 = vadd.f32 1.0, %v2114_v39  ;;  %v1755_v62 = vunpack.c.l.bf16 %v1884_v40 }
 0x121   : > { %2139 = vrcp.f32 %v1073_v41  ;;  %v2116_v8 = vpop.eup %2115  ;;  %v1792_v23 = vunpack.c.h.bf16 %v1893_v55  ;;  %v1787_v46 = vunpack.c.l.bf16 %v1892_v34  ;;  %v1756_v29 = vunpack.c.h.bf16 %v1884_v40  ;;  %v1887_v41 = vld [vmem:[%s2290_s14 + $0x38] sm:$0xff]  }
 0x122   : > { %1905 = vst [vmem:[%s2530_s24 + $0x50] sm:$0xff] %v1854_v31   ;;  %2141 = vrcp.f32 %v1089_v0  ;;  %v2118_v53 = vpop.eup %2117  ;;  %v1076_v63 = vadd.f32 1.0, %v2116_v8  ;;  %v1788_v26 = vunpack.c.h.bf16 %v1892_v34  ;;  %v1895_v0 = vld [vmem:[%s2290_s14 + $0x78] sm:$0xff]   ;;  %v1894_v34 = vld [vmem:[%s2290_s14 + $0x70] sm:$0xff]  }
 0x123   : > { %2143 = vrcp.f32 %v1078_v7  ;;  %v2120_v42 = vpop.eup %2119  ;;  %v1092_v60 = vadd.f32 1.0, %v2118_v53  ;;  %v1886_v53 = vld [vmem:[%s2290_s14 + $0x30] sm:$0xff]  }
 0x124   : > { %2145 = vrcp.f32 %v1094_v44  ;;  %v1079_v38 = vadd.f32 1.0, %v2120_v42  ;;  %v1767_v42 = vunpack.c.l.bf16 %v1887_v41  ;;  %v1764_v55 = vunpack.c.h.bf16 %v1886_v53 }
 0x125   : > { %v2122_v14 = vpop.eup %2121  ;;  %2147 = vrcp.f32 %v1076_v63 }
 0x126   : > { %v2124_v17 = vpop.eup %2123  ;;  %v1095_v12 = vadd.f32 1.0, %v2122_v14  ;;  %2149 = vrcp.f32 %v1079_v38 }
 0x127   : > { %v2126_v57 = vpop.eup %2125  ;;  %v1077_v36 = vadd.f32 1.0, %v2124_v17 }
 0x128   : > { %v2128_v33 = vpop.eup %2127  ;;  %2151 = vrcp.f32 %v1095_v12  ;;  %v1170_v49 = vmul.f32 %v2126_v57, %v2422_v19  ;;  %v1800_v12 = vunpack.c.h.bf16 %v1895_v0 }
 0x129   : > { %v2130_v22 = vpop.eup %2129  ;;  %2153 = vrcp.f32 %v1077_v36  ;;  %v1186_v48 = vmul.f32 %v2128_v33, %v2425_v20  ;;  %v1763_v33 = vunpack.c.l.bf16 %v1886_v53 }
 0x12a   : > { %v2132_v37 = vpop.eup %2131  ;;  %2155 = vrcp.f32 %v1092_v60  ;;  %v1168_v45 = vmul.f32 %v2130_v22, %v2430_v43  ;;  %v1266_v18 = vadd.f32 %v1759_v58, %v1170_v49  ;;  %v1799_v60 = vunpack.c.l.bf16 %v1895_v0 }
 0x12b   : > { %v2134_v27 = vpop.eup %2133  ;;  %v1184_v19 = vmul.f32 %v2132_v37, %v2433_v50  ;;  %v1282_v51 = vadd.f32 %v1791_v25, %v1186_v48 }
 0x12c   : > { %v2136_v1 = vpop.eup %2135  ;;  %v1093_v5 = vadd.f32 1.0, %v2134_v27  ;;  %v1264_v50 = vadd.f32 %v1755_v62, %v1168_v45 }
 0x12d   : > { %v2138_v54 = vpop.eup %2137  ;;  %v1171_v6 = vmul.f32 %v2136_v1, %v2445_v15  ;;  %v1280_v7 = vadd.f32 %v1787_v46, %v1184_v19  ;;  %v1795_v1 = vunpack.c.l.bf16 %v1894_v34 }
 0x12e   : > { %v2140_v52 = vpop.eup %2139  ;;  %v1187_v47 = vmul.f32 %v2138_v54, %v2459_v61  ;;  %2157 = vrcp.f32 %v1093_v5 }
 0x12f   : > { %v2142_v20 = vpop.eup %2141  ;;  %v1267_v3 = vadd.f32 %v1760_v32, %v1171_v6  ;;  %v1169_v30 = vmul.f32 %v2140_v52, %v2467_v59 }
 0x130   : > { %v2144_v43 = vpop.eup %2143  ;;  %v1283_v24 = vadd.f32 %v1792_v23, %v1187_v47  ;;  %v1185_v15 = vmul.f32 %v2142_v20, %v2470_v13  ;;  %v1768_v13 = vunpack.c.h.bf16 %v1887_v41 }
 0x131   : > { %v2146_v4 = vpop.eup %2145  ;;  %v1829_v61 = vpack.c.bf16 %v1267_v3, %v1266_v18  ;;  %v1265_v31 = vadd.f32 %v1756_v29, %v1169_v30  ;;  %v1174_v63 = vmul.f32 %v2144_v43, %v2473_v56 }
 0x132   : > { %v2148_v39 = vpop.eup %2147  ;;  %v1869_v8 = vpack.c.bf16 %v1283_v24, %v1282_v51  ;;  %v1281_v44 = vadd.f32 %v1788_v26, %v1185_v15  ;;  %v1190_v17 = vmul.f32 %v2146_v4, %v2476_v9 }
 0x133   : > { %1900 = vst [vmem:[%s2530_s24 + $0x28] sm:$0xff] %v1829_v61   ;;  %v1824_v59 = vpack.c.bf16 %v1265_v31, %v1264_v50  ;;  %v2150_v14 = vpop.eup %2149  ;;  %v1172_v36 = vmul.f32 %v2148_v39, %v2480_v28  ;;  %v1270_v37 = vadd.f32 %v1767_v42, %v1174_v63 }
 0x134   : > { %1908 = vst [vmem:[%s2530_s24 + $0x68] sm:$0xff] %v1869_v8   ;;  %v1864_v38 = vpack.c.bf16 %v1281_v44, %v1280_v7  ;;  %v1175_v2 = vmul.f32 %v2150_v14, %v2500_v10  ;;  %v1286_v49 = vadd.f32 %v1799_v60, %v1190_v17 }
 0x135   : > { %v2152_v57 = vpop.eup %2151  ;;  %1899 = vst [vmem:[%s2530_s24 + $0x20] sm:$0xff] %v1824_v59   ;;  %v1268_v28 = vadd.f32 %v1763_v33, %v1172_v36 }
 0x136   : > { %v2154_v56 = vpop.eup %2153  ;;  %1907 = vst [vmem:[%s2530_s24 + $0x60] sm:$0xff] %v1864_v38   ;;  %v1191_v22 = vmul.f32 %v2152_v57, %v2505_v11  ;;  %v1271_v9 = vadd.f32 %v1768_v13, %v1175_v2  ;;  %v1796_v11 = vunpack.c.h.bf16 %v1894_v34 }
 0x137   : > { %v2156_v40 = vpop.eup %2155  ;;  %v1173_v27 = vmul.f32 %v2154_v56, %v2516_v16 }
 0x138   : > { %v1287_v58 = vadd.f32 %v1800_v12, %v1191_v22  ;;  %v1839_v25 = vpack.c.bf16 %v1271_v9, %v1270_v37  ;;  %v1188_v32 = vmul.f32 %v2156_v40, %v2483_v21 }
 0x139   : > { %v1269_v10 = vadd.f32 %v1764_v55, %v1173_v27 }
 0x13a   : > { %v1879_v48 = vpack.c.bf16 %v1287_v58, %v1286_v49  ;;  %1902 = vst [vmem:[%s2530_s24 + $0x38] sm:$0xff] %v1839_v25   ;;  %v1284_v54 = vadd.f32 %v1795_v1, %v1188_v32 }
 0x13b   : > { %v2158_v62 = vpop.eup %2157  ;;  %v1834_v23 = vpack.c.bf16 %v1269_v10, %v1268_v28 }
 0x13c   : > { %1910 = vst [vmem:[%s2530_s24 + $0x78] sm:$0xff] %v1879_v48   ;;  %v1189_v5 = vmul.f32 %v2158_v62, %v2538_v35 }
 0x13d   : > { %1901 = vst [vmem:[%s2530_s24 + $0x30] sm:$0xff] %v1834_v23  }
 0x13e   : > { %v1285_v16 = vadd.f32 %v1796_v11, %v1189_v5 }
 0x140   : > { %v1874_v45 = vpack.c.bf16 %v1285_v16, %v1284_v54 }
 0x142   : > { %1909 = vst [vmem:[%s2530_s24 + $0x70] sm:$0xff] %v1874_v45  }
 0x143 PF: > { %s15_s20 = sadd.s32 1, %s2181_s20   ;;  %s2638_s18 = smov %s2177_s19 }
 0x144   : > { %p12_p5 = scmp.ge.s32.totalorder %s15_s20, 4   ;;  %s2639_s19 = smov %s2641_s21 }
 0x146   :  { %14 = sbr.rel (!%p12_p5) target bundleno = 2 (0x2), region = 90 }

// kernel: fused_mbconv_stack_forward.9
= control target key start
LH: loop header
LB: loop body
LE: loop exit
PB: predicated region body
PF: predicated region fallthrough
CT: control target
= control target key end

     0   :  { %s911_s1 = inlined_call_operand.vmem [shape: bf16[128,128], index: 1, kind: input, shape index: {}]   ;;  %s912_s0 = inlined_call_operand.vmem [shape: bf16[128,128], index: 0, kind: input, shape index: {}]   ;;  %s913_s2 = inlined_call_operand.vmem [shape: f32[1,128], index: 2, kind: input, shape index: {}]   ;;  %s914_s4 = inlined_call_operand.vmem [shape: bf16[128,128], index: 4, kind: input, shape index: {}]   ;;  %s915_s3 = inlined_call_operand.vmem [shape: f32[1,128], index: 3, kind: input, shape index: {}]   ;;  %s916_s5 = inlined_call_operand.vmem [shape: bf16[128,128], index: 5, kind: output, shape index: {}]  }
   0x1   :  { %v711_v0 = vld [vmem:[%s911_s1 + $0x38] sm:$0xff]   ;;  %v712_v1 = vld [vmem:[%s911_s1 + $0x30] sm:$0xff]   ;;  %v713_v2 = vld [vmem:[%s911_s1 + $0x28] sm:$0xff]  }
   0x2   :  { %663 = vmatprep.subr.bf16.mxu0 %v711_v0  ;;  %695 = vmatprep.subr.bf16.mxu1 %v711_v0  ;;  %v714_v3 = vld [vmem:[%s911_s1 + $0x20] sm:$0xff]   ;;  %v715_v6 = vld [vmem:[%s911_s1 + $0x18] sm:$0xff]   ;;  %v716_v7 = vld [vmem:[%s911_s1 + $0x10] sm:$0xff]  }
   0x3   :  { %664 = vmatpush3.bf16.msra.mxu0 %v711_v0  ;;  %703 = vmatpush3.bf16.msra.mxu1 %v711_v0  ;;  %v719_v4 = vld [vmem:[%s912_s0] sm:$0xff]   ;;  %v717_v8 = vld [vmem:[%s911_s1 + $0x8] sm:$0xff]   ;;  %v723_v12 = vld [vmem:[%s912_s0 + $0x10] sm:$0xff]  }
   0x4   :  { %665 = vmatprep.subr.bf16.mxu0 %v712_v1  ;;  %696 = vmatprep.subr.bf16.mxu1 %v712_v1  ;;  %v720_v5 = vld [vmem:[%s912_s0 + $0x20] sm:$0xff]   ;;  %v721_v10 = vld [vmem:[%s912_s0 + $0x8] sm:$0xff]   ;;  %v724_v13 = vld [vmem:[%s912_s0 + $0x30] sm:$0xff]  }
   0x5   :  { %679 = vmatprep.mubr.bf16.mxu0 %v719_v4  ;;  %687 = vmatprep.mubr.bf16.mxu1 %v720_v5  ;;  %v718_v9 = vld [vmem:[%s911_s1] sm:$0xff]   ;;  %v722_v11 = vld [vmem:[%s912_s0 + $0x28] sm:$0xff]   ;;  %v725_v14 = vld [vmem:[%s912_s0 + $0x18] sm:$0xff]  }
   0x6   :  { %v726_v15 = vld [vmem:[%s912_s0 + $0x38] sm:$0xff]   ;;  %v808_v16 = vld [vmem:[%s913_s2] ss:$0 sm:$0xff]  ;;  %v633_v17 = vld [vmem:[%s914_s4 + $0x8] sm:$0xff]  }
   0x7   :  { %666 = vmatpush3.bf16.msra.mxu0 %v712_v1  ;;  %704 = vmatpush3.bf16.msra.mxu1 %v712_v1  ;;  %v637_v18 = vld [vmem:[%s914_s4 + $0x28] sm:$0xff]   ;;  %v562_v21 = vld [vmem:[%s914_s4] sm:$0xff]   ;;  %v567_v26 = vunpack.c.l.bf16 %v633_v17  ;;  %v832_v30 = vld [vmem:[%s914_s4 + $0x18] sm:$0xff]   ;;  %v568_v39 = vunpack.c.h.bf16 %v633_v17 }
   0x8   :  { %667 = vmatprep.subr.bf16.mxu0 %v713_v2  ;;  %697 = vmatprep.subr.bf16.mxu1 %v713_v2  ;;  %v636_v22 = vld [vmem:[%s914_s4 + $0x20] sm:$0xff]   ;;  %v583_v27 = vunpack.c.l.bf16 %v637_v18  ;;  %v837_v31 = vld [vmem:[%s914_s4 + $0x38] sm:$0xff]   ;;  %v563_v33 = vunpack.c.l.bf16 %v562_v21  ;;  %v844_v36 = vld [vmem:[%s914_s4 + $0x10] sm:$0xff]   ;;  %v584_v41 = vunpack.c.h.bf16 %v637_v18  ;;  %v564_v42 = vunpack.c.h.bf16 %v562_v21 }
   0x9   :  { %v827_v25 = vld [vmem:[%s915_s3] ss:$0 sm:$0xff]  ;;  %v579_v35 = vunpack.c.l.bf16 %v636_v22  ;;  %v849_v37 = vld [vmem:[%s914_s4 + $0x30] sm:$0xff]   ;;  %v580_v43 = vunpack.c.h.bf16 %v636_v22  ;;  %v575_v46 = vunpack.c.l.bf16 %v832_v30  ;;  %v591_v47 = vunpack.c.l.bf16 %v837_v31 }
   0xa   :  { %v571_v52 = vunpack.c.l.bf16 %v844_v36  ;;  %v587_v53 = vunpack.c.l.bf16 %v849_v37  ;;  %v576_v62 = vunpack.c.h.bf16 %v832_v30  ;;  %v592_v63 = vunpack.c.h.bf16 %v837_v31 }
   0xb   :  { %668 = vmatpush3.bf16.msra.mxu0 %v713_v2  ;;  %705 = vmatpush3.bf16.msra.mxu1 %v713_v2 }
   0xc   :  { %669 = vmatprep.subr.bf16.mxu0 %v714_v3  ;;  %698 = vmatprep.subr.bf16.mxu1 %v714_v3 }
   0xf   :  { %670 = vmatpush3.bf16.msra.mxu0 %v714_v3  ;;  %706 = vmatpush3.bf16.msra.mxu1 %v714_v3 }
  0x10   :  { %671 = vmatprep.subr.bf16.mxu0 %v715_v6  ;;  %699 = vmatprep.subr.bf16.mxu1 %v715_v6 }
  0x13   :  { %672 = vmatpush3.bf16.msra.mxu0 %v715_v6  ;;  %707 = vmatpush3.bf16.msra.mxu1 %v715_v6 }
  0x14   :  { %673 = vmatprep.subr.bf16.mxu0 %v716_v7  ;;  %700 = vmatprep.subr.bf16.mxu1 %v716_v7 }
  0x17   :  { %674 = vmatpush3.bf16.msra.mxu0 %v716_v7  ;;  %708 = vmatpush3.bf16.msra.mxu1 %v716_v7 }
  0x18   :  { %675 = vmatprep.subr.bf16.mxu0 %v717_v8  ;;  %701 = vmatprep.subr.bf16.mxu1 %v717_v8 }
  0x1b   :  { %676 = vmatpush3.bf16.msra.mxu0 %v717_v8  ;;  %709 = vmatpush3.bf16.msra.mxu1 %v717_v8 }
  0x1c   :  { %677 = vmatprep.subr.bf16.mxu0 %v718_v9  ;;  %702 = vmatprep.subr.bf16.mxu1 %v718_v9 }
  0x1f   :  { %678 = vmatpush3.bf16.msra.mxu0 %v718_v9  ;;  %710 = vmatpush3.bf16.msra.mxu1 %v718_v9 }
  0x22   :  { %680 = vmatmul.mubr.bf16.vlgmr.msra.gmra.mxu0 %v721_v10  ;;  %688 = vmatmul.mubr.bf16.vlgmr.msra.gmra.mxu1 %v722_v11 }
  0x23   :  { %683 = vmatprep.mubr.bf16.mxu0 %v723_v12  ;;  %691 = vmatprep.mubr.bf16.mxu1 %v724_v13 }
  0x2a   :  { %684 = vmatmul.mubr.bf16.gmra.mxu0 %v725_v14  ;;  %692 = vmatmul.mubr.bf16.gmra.mxu1 %v726_v15 }
  0xe2   :  { %v681_v19 = vpop.f32.mrf.mxu0  ;;  %v689_v20 = vpop.f32.mrf.mxu1 }
  0xe3   :  { %v342_v23 = vmul.f32 %v681_v19, %v808_v16  ;;  %v350_v24 = vmul.f32 %v689_v20, %v808_v16 }
  0xe4   :  { %v219_v28 = vpop.f32.mrf.mxu0  ;;  %v251_v29 = vpop.f32.mrf.mxu1 }
  0xe5   :  { %v340_v32 = vmul.f32 %v808_v16, %v219_v28  ;;  %v348_v34 = vmul.f32 %v808_v16, %v251_v29  ;;  %v365_v44 = vadd.f32 %v827_v25, %v342_v23  ;;  %v373_v45 = vadd.f32 %v827_v25, %v350_v24 }
  0xe6   :  { %v682_v38 = vpop.f32.mrf.mxu0  ;;  %v690_v40 = vpop.f32.mrf.mxu1  ;;  %v572_v23 = vunpack.c.h.bf16 %v844_v36  ;;  %v588_v24 = vunpack.c.h.bf16 %v849_v37 }
  0xe7   :  { %v343_v48 = vmul.f32 %v682_v38, %v808_v16  ;;  %v351_v49 = vmul.f32 %v690_v40, %v808_v16  ;;  %v363_v54 = vadd.f32 %v827_v25, %v340_v32  ;;  %v371_v55 = vadd.f32 %v827_v25, %v348_v34 }
  0xe8   :  { %v222_v50 = vpop.f32.mrf.mxu0  ;;  %v254_v51 = vpop.f32.mrf.mxu1  ;;  %v413_v0 = vadd.f32 %v567_v26, %v365_v44  ;;  %v421_v1 = vadd.f32 %v583_v27, %v373_v45 }
  0xe9   :  { %v341_v56 = vmul.f32 %v808_v16, %v222_v50  ;;  %v349_v57 = vmul.f32 %v808_v16, %v254_v51  ;;  %v366_v58 = vadd.f32 %v827_v25, %v343_v48  ;;  %v374_v59 = vadd.f32 %v827_v25, %v351_v49 }
  0xea   :  { %v685_v60 = vpop.f32.mrf.mxu0  ;;  %v693_v61 = vpop.f32.mrf.mxu1  ;;  %v411_v10 = vadd.f32 %v563_v33, %v363_v54  ;;  %v419_v11 = vadd.f32 %v579_v35, %v371_v55 }
  0xeb   :  { %v364_v2 = vadd.f32 %v827_v25, %v341_v56  ;;  %v372_v3 = vadd.f32 %v827_v25, %v349_v57  ;;  %v414_v4 = vadd.f32 %v568_v39, %v366_v58  ;;  %v422_v5 = vadd.f32 %v584_v41, %v374_v59 }
  0xec   :  { %v346_v6 = vmul.f32 %v685_v60, %v808_v16  ;;  %v354_v7 = vmul.f32 %v693_v61, %v808_v16  ;;  %v235_v8 = vpop.f32.mrf.mxu0  ;;  %v267_v9 = vpop.f32.mrf.mxu1 }
  0xed   :  { %v412_v12 = vadd.f32 %v564_v42, %v364_v2  ;;  %v420_v13 = vadd.f32 %v580_v43, %v372_v3  ;;  %v601_v14 = vpack.c.bf16 %v414_v4, %v413_v0  ;;  %v621_v15 = vpack.c.bf16 %v422_v5, %v421_v1 }
  0xee   :  { %v344_v17 = vmul.f32 %v808_v16, %v235_v8  ;;  %v352_v18 = vmul.f32 %v808_v16, %v267_v9  ;;  %v686_v19 = vpop.f32.mrf.mxu0  ;;  %v694_v20 = vpop.f32.mrf.mxu1  ;;  %v369_v26 = vadd.f32 %v827_v25, %v346_v6  ;;  %v377_v27 = vadd.f32 %v827_v25, %v354_v7 }
  0xef   :  { %v596_v21 = vpack.c.bf16 %v412_v12, %v411_v10  ;;  %v616_v22 = vpack.c.bf16 %v420_v13, %v419_v11  ;;  %640 = vst [vmem:[%s916_s5 + $0x8] sm:$0xff] %v601_v14   ;;  %644 = vst [vmem:[%s916_s5 + $0x28] sm:$0xff] %v621_v15   ;;  %v347_v28 = vmul.f32 %v686_v19, %v808_v16 }
  0xf0   :  { %v355_v29 = vmul.f32 %v694_v20, %v808_v16  ;;  %v238_v30 = vpop.f32.mrf.mxu0  ;;  %v270_v31 = vpop.f32.mrf.mxu1  ;;  %v367_v32 = vadd.f32 %v827_v25, %v344_v17  ;;  %v375_v33 = vadd.f32 %v827_v25, %v352_v18  ;;  %v417_v40 = vadd.f32 %v575_v46, %v369_v26 }
  0xf1   :  { %597 = vst [vmem:[%s916_s5] sm:$0xff] %v596_v21   ;;  %643 = vst [vmem:[%s916_s5 + $0x20] sm:$0xff] %v616_v22   ;;  %v345_v34 = vmul.f32 %v808_v16, %v238_v30  ;;  %v353_v35 = vmul.f32 %v808_v16, %v270_v31  ;;  %v370_v36 = vadd.f32 %v827_v25, %v347_v28 }
  0xf2   :  { %v378_v37 = vadd.f32 %v827_v25, %v355_v29  ;;  %v425_v41 = vadd.f32 %v591_v47, %v377_v27  ;;  %v415_v44 = vadd.f32 %v571_v52, %v367_v32  ;;  %v423_v45 = vadd.f32 %v587_v53, %v375_v33 }
  0xf3   :  { %v368_v38 = vadd.f32 %v827_v25, %v345_v34  ;;  %v376_v39 = vadd.f32 %v827_v25, %v353_v35  ;;  %v418_v42 = vadd.f32 %v576_v62, %v370_v36 }
  0xf4   :  { %v426_v43 = vadd.f32 %v592_v63, %v378_v37 }
  0xf5   :  { %v416_v48 = vadd.f32 %v572_v23, %v368_v38  ;;  %v424_v49 = vadd.f32 %v588_v24, %v376_v39  ;;  %v611_v50 = vpack.c.bf16 %v418_v42, %v417_v40 }
  0xf6   :  { %v631_v51 = vpack.c.bf16 %v426_v43, %v425_v41 }
  0xf7   :  { %v606_v54 = vpack.c.bf16 %v416_v48, %v415_v44  ;;  %v626_v16 = vpack.c.bf16 %v424_v49, %v423_v45  ;;  %642 = vst [vmem:[%s916_s5 + $0x18] sm:$0xff] %v611_v50  }
  0xf8   :  { %646 = vst [vmem:[%s916_s5 + $0x38] sm:$0xff] %v631_v51  }
  0xf9   :  { %641 = vst [vmem:[%s916_s5 + $0x10] sm:$0xff] %v606_v54   ;;  %645 = vst [vmem:[%s916_s5 + $0x30] sm:$0xff] %v626_v16  }

</bundles_post_ra>
